<compile_context>
chip_gen: v5e
topology: v5e:2x2
jax: 0.10.0
libtpu: 0.0.40
codegen_flags: <defaults>
</compile_context>

<pallas_src>
import numpy as np
import jax
import jax.numpy as jnp
from jax import lax
from jax.experimental import pallas as pl
from jax.experimental.pallas import tpu as pltpu

ROWPAD = 8  # zero rows around/between images in scratch (>= max conv pad 3, sublane aligned)


# ----------------------------- fused kernel --------------------------------

def _make_fused_kernel(H, W, Cin, Cout, NB):
    WCin, WCout = W * Cin, W * Cout
    STRIDE = H + ROWPAD                     # per-image row stride inside scratch
    SPAN = NB * STRIDE - ROWPAD             # first..last interior row (matmul M)
    TOTAL = ROWPAD + NB * STRIDE            # scratch rows incl. top & bottom pad

    def conv_span(src_ref, K, pad, bmat_ref, bias_row, relu):
        # One KxK conv over the whole stacked span as K MXU matmuls.
        # LHS slices are cast to bf16 at the dot; accumulation stays f32.
        acc = jnp.zeros((SPAN, bmat_ref.shape[-1]), jnp.float32)
        for ky in range(K):
            o = ROWPAD + ky - pad
            lhs = src_ref[o:o + SPAN, :].astype(jnp.bfloat16)
            acc += jnp.dot(lhs, bmat_ref[ky], preferred_element_type=jnp.float32)
        acc = acc + bias_row
        if relu:
            acc = jnp.maximum(acc, 0.0)
        return acc

    def kernel(x_ref, b3171_ref, b32_ref, b72_ref, b1_ref, bias_ref, o_ref,
               xin_p, a3_p, a7_p):
        # ---- zero the pad rows (top / inter-image / bottom) of every scratch.
        # Interiors are fully rewritten each step and pads are never dirtied,
        # so this only *needs* to run once per core; but under a "parallel"
        # grid axis a v7x core may start at program_id > 0, so we zero every
        # step (a few extra vector stores) instead of gating on program_id==0.
        zin = jnp.zeros((ROWPAD, WCin), jnp.float32)
        zout = jnp.zeros((ROWPAD, WCout), jnp.float32)
        xin_p[0:ROWPAD, :] = zin
        a3_p[0:ROWPAD, :] = zout
        a7_p[0:ROWPAD, :] = zout
        for i in range(NB):
            lo = ROWPAD + i * STRIDE + H          # pad block below image i
            xin_p[lo:lo + ROWPAD, :] = zin
            a3_p[lo:lo + ROWPAD, :] = zout
            a7_p[lo:lo + ROWPAD, :] = zout

        # ---- stack the NB input images into the row-padded scratch ---------
        for i in range(NB):
            base = ROWPAD + i * STRIDE
            xin_p[base:base + H, :] = x_ref[i].astype(jnp.float32)

        # ---- first layer: 3x3 and 7x7 co-computed, 256 output lanes --------
        # (3x3 taps live at ky = 2..4 of the 7-tap fused weight; offset -3)
        acc = jnp.zeros((SPAN, 2 * WCout), jnp.float32)
        for ky in range(7):
            o = ROWPAD + ky - 3
            lhs = xin_p[o:o + SPAN, :].astype(jnp.bfloat16)
            acc += jnp.dot(lhs, b3171_ref[ky], preferred_element_type=jnp.float32)
        a1_3 = jnp.maximum(acc[:, :WCout] + bias_ref[0:1, :], 0.0)
        a1_7 = jnp.maximum(acc[:, WCout:] + bias_ref[2:3, :], 0.0)
        # per-image interior writes keep the inter-image pad rows zero
        for i in range(NB):
            base = ROWPAD + i * STRIDE
            rel = i * STRIDE
            a3_p[base:base + H, :] = a1_3[rel:rel + H, :]
            a7_p[base:base + H, :] = a1_7[rel:rel + H, :]

        # ---- second layers ---------------------------------------------------
        x3 = conv_span(a3_p, 3, 1, b32_ref, bias_ref[1:2, :], True)
        x7 = conv_span(a7_p, 7, 3, b72_ref, bias_ref[3:4, :], True)

        # ---- concat + 1x1 conv as ONE 256-deep matmul ------------------------
        cat = jnp.concatenate([x3, x7], axis=1).astype(jnp.bfloat16)
        out = (jnp.dot(cat, b1_ref[...], preferred_element_type=jnp.float32)
               + bias_ref[4:5, :])
        for i in range(NB):
            rel = i * STRIDE
            o_ref[i] = out[rel:rel + H, :].astype(o_ref.dtype)

    return kernel


# --------------------- host-side weight preparation ------------------------

def _banded_weights(w_oihw, W, pad):
    """OIHW conv weight -> (K, W*Cin, W*Cout) block-banded matrices (np.f32).

    B[ky, wi*Cin+ci, wo*Cout+co] = w[co, ci, ky, kx] where wi = wo + kx - pad;
    rows with wi outside [0, W) are omitted (they hit zero padding).
    """
    w = np.asarray(w_oihw, np.float32)
    Cout, Cin, K, _ = w.shape
    B = np.zeros((K, W * Cin, W * Cout), np.float32)
    for ky in range(K):
        for kx in range(K):
            blk = w[:, :, ky, kx].T                     # (Cin, Cout)
            for wo in range(W):
                wi = wo + kx - pad
                if 0 <= wi < W:
                    B[ky, wi * Cin:(wi + 1) * Cin,
                      wo * Cout:(wo + 1) * Cout] = blk
    return B


def _banded_1x1(w_oi, W):
    """(Cout, Cg) 1x1 weight slice -> (W*Cg, W*Cout) block-diagonal (np.f32)."""
    w = np.asarray(w_oi, np.float32)                    # (Cout, Cg)
    Cout, Cg = w.shape
    B = np.zeros((W * Cg, W * Cout), np.float32)
    for wo in range(W):
        B[wo * Cg:(wo + 1) * Cg, wo * Cout:(wo + 1) * Cout] = w.T
    return B


def prepare_params(params, W, ch_out):
    """One-time re-layout of PyTorch-shaped parameters for the fused kernel."""
    (w31, b31), (w32, b32) = params["c3_1"], params["c3_2"]
    (w71, b71), (w72, b72) = params["c7_1"], params["c7_2"]
    (w1, b1) = params["c1"]
    Cin = int(np.asarray(w31).shape[1])
    WCout = W * ch_out

    B31 = _banded_weights(w31, W, 1)                    # (3, W*Cin, WCout)
    B71 = _banded_weights(w71, W, 3)                    # (7, W*Cin, WCout)
    # Fused first layer: 3x3 taps embedded at ky = 2..4 of a 7-tap stack,
    # concatenated with the 7x7 weights along output lanes -> (7, W*Cin, 2*WCout)
    B3171 = np.zeros((7, W * Cin, 2 * WCout), np.float32)
    B3171[2:5, :, :WCout] = B31
    B3171[:, :, WCout:] = B71

    w1np = np.asarray(w1, np.float32)
    # torch.cat((x3, x7), dim=1): rows 0:ch_out act on x3, rows ch_out: on x7.
    B1 = np.concatenate([_banded_1x1(w1np[:, :ch_out, 0, 0], W),
                         _banded_1x1(w1np[:, ch_out:, 0, 0], W)], axis=0)

    return {
        # bf16 matmul operands (f32 accumulation inside the kernel)
        "B3171": jnp.asarray(B3171, dtype=jnp.bfloat16),
        "B32": jnp.asarray(_banded_weights(w32, W, 1), dtype=jnp.bfloat16),
        "B72": jnp.asarray(_banded_weights(w72, W, 3), dtype=jnp.bfloat16),
        "B1": jnp.asarray(B1, dtype=jnp.bfloat16),
        "biases": jnp.stack(
            [jnp.tile(jnp.asarray(b, jnp.float32), W)
             for b in (b31, b32, b71, b72, b1)], axis=0),      # (5, W*Cout) f32
    }


# ------------------------------ forward pass -------------------------------

def _pick_nb(N, H):
    """Largest divisor of N whose stacked matmul M (~NB*H) stays around 128."""
    cap = max(1, 128 // H)
    nb = 1
    for d in range(1, N + 1):
        if N % d == 0 and d <= cap:
            nb = d
    return nb


def ms_unet_conv_block(x_nchw, prep, nb=None):
    """Forward of MSUNetConvBlock (padding=True, batch_norm=False)."""
    N, Cin, H, W = x_nchw.shape
    Cout = prep["biases"].shape[1] // W
    WCin, WCout = W * Cin, W * Cout
    assert H % 8 == 0, "per-image scratch stride must stay sublane aligned"
    # TODO(synk): general (non-multiple-of-8) H needs ragged bottom padding.
    if nb is None:
        nb = _pick_nb(N, H)
    assert N % nb == 0

    # NCHW -> lane-flattened NHWC rows (H, W*Cin)
    x = jnp.transpose(x_nchw, (0, 2, 3, 1)).reshape(N, H, WCin)

    kernel = _make_fused_kernel(H, W, Cin, Cout, nb)
    total = ROWPAD + nb * (H + ROWPAD)

    out = pl.pallas_call(
        kernel,
        out_shape=jax.ShapeDtypeStruct((N, H, WCout), x_nchw.dtype),
        grid=(N // nb,),
        in_specs=[
            pl.BlockSpec((nb, H, WCin), lambda n: (n, 0, 0)),          # x (NB imgs)
            pl.BlockSpec((7, WCin, 2 * WCout), lambda n: (0, 0, 0)),   # B3171 fused
            pl.BlockSpec((3, WCout, WCout), lambda n: (0, 0, 0)),      # B3_2
            pl.BlockSpec((7, WCout, WCout), lambda n: (0, 0, 0)),      # B7_2
            pl.BlockSpec((2 * WCout, WCout), lambda n: (0, 0)),        # B1 (stacked)
            pl.BlockSpec((5, WCout), lambda n: (0, 0)),                # biases
        ],
        out_specs=pl.BlockSpec((nb, H, WCout), lambda n: (n, 0, 0)),
        scratch_shapes=[
            pltpu.VMEM((total, WCin), jnp.float32),    # row-padded stacked input
            pltpu.VMEM((total, WCout), jnp.float32),   # row-padded 3x3 intermediate
            pltpu.VMEM((total, WCout), jnp.float32),   # row-padded 7x7 intermediate
        ],
        compiler_params=pltpu.CompilerParams(
            dimension_semantics=("parallel",)),
    )(x, prep["B3171"], prep["B32"], prep["B72"], prep["B1"], prep["biases"])

    # (N, H, W*Cout) -> NCHW
    return jnp.transpose(out.reshape(N, H, W, Cout), (0, 3, 1, 2))


# -------------------- parameters & pure-JAX reference ----------------------

def init_params(key, ch_in, ch_out):
    """Deterministic synthetic parameters matching the PyTorch module shapes."""
    ks = jax.random.split(key, 10)
    s = 0.1

    def conv_p(k, cout, cin, ksize):
        kw, kb = jax.random.split(k)
        w = jax.random.normal(kw, (cout, cin, ksize, ksize), jnp.float32) * s
        b = jax.random.normal(kb, (cout,), jnp.float32) * s
        return w, b

    return {
        "c3_1": conv_p(ks[0], ch_out, ch_in, 3),
        "c3_2": conv_p(ks[1], ch_out, ch_out, 3),
        "c7_1": conv_p(ks[2], ch_out, ch_in, 7),
        "c7_2": conv_p(ks[3], ch_out, ch_out, 7),
        "c1": conv_p(ks[4], ch_out, 2 * ch_out, 1),
    }


def _conv_ref(x_nhwc, w_oihw, b, pad, relu, quant=False):
    if quant:   # mirror the kernel's bf16 matmul operands (f32 accumulation)
        x_nhwc = x_nhwc.astype(jnp.bfloat16).astype(jnp.float32)
        w_oihw = jnp.asarray(w_oihw).astype(jnp.bfloat16).astype(jnp.float32)
    w_hwio = jnp.transpose(jnp.asarray(w_oihw, jnp.float32), (2, 3, 1, 0))
    y = lax.conv_general_dilated(
        x_nhwc, w_hwio, window_strides=(1, 1),
        padding=[(pad, pad), (pad, pad)],
        dimension_numbers=("NHWC", "HWIO", "NHWC"),
        precision=lax.Precision.HIGHEST)
    y = y + jnp.asarray(b, jnp.float32).reshape(1, 1, 1, -1)
    return jnp.maximum(y, 0.0) if relu else y


def ms_unet_conv_block_ref(x_nchw, params, quant=False):
    x = jnp.transpose(x_nchw, (0, 2, 3, 1))
    w, b = params["c3_1"]; x3 = _conv_ref(x, w, b, 1, True, quant)
    w, b = params["c3_2"]; x3 = _conv_ref(x3, w, b, 1, True, quant)
    w, b = params["c7_1"]; x7 = _conv_ref(x, w, b, 3, True, quant)
    w, b = params["c7_2"]; x7 = _conv_ref(x7, w, b, 3, True, quant)
    xc = jnp.concatenate([x3, x7], axis=-1)
    w, b = params["c1"]; out = _conv_ref(xc, w, b, 0, False, quant)
    return jnp.transpose(out, (0, 3, 1, 2))


# TODO(synk): batch_norm=True (training-mode batch statistics) not implemented;
# this instantiation uses batch_norm=False as allowed by the constructor flag.

if __name__ == "__main__":
    key = jax.random.PRNGKey(0)
    k_x, k_p = jax.random.split(key)

    N, ch_in, ch_out, H, W = 2, 4, 8, 16, 16
    x = jax.random.normal(k_x, (N, ch_in, H, W), jnp.float32)
    params = init_params(k_p, ch_in, ch_out)
    prep = prepare_params(params, W, ch_out)   # one-time weight re-layout

    fwd = jax.jit(ms_unet_conv_block)
    out = jax.block_until_ready(fwd(x, prep))

    # Tight check against a reference with identical bf16 operand quantization
    # (only summation-order / f32-rounding differences remain).
    ref_q = jax.block_until_ready(ms_unet_conv_block_ref(x, params, quant=True))
    # Sanity check against the exact f32 reference (bf16 quantization budget).
    ref = jax.block_until_ready(ms_unet_conv_block_ref(x, params, quant=False))

    assert out.shape == (N, ch_out, H, W), out.shape
    assert jnp.allclose(out, ref_q, rtol=2e-3, atol=2e-3), (
        float(jnp.max(jnp.abs(out - ref_q))))
    assert jnp.allclose(out, ref, rtol=5e-2, atol=5e-2), (
        float(jnp.max(jnp.abs(out - ref))))

    print("KERNEL_OK")
</pallas_src>

<mosaic_0001>
module attributes {stable_mosaic.version = 11 : i64} {
  func.func @kernel(%arg0: i32, %arg1: memref<2x16x64xf32, #tpu.memory_space<vmem>>, %arg2: memref<7x64x256xbf16, #tpu.memory_space<vmem>>, %arg3: memref<3x128x128xbf16, #tpu.memory_space<vmem>>, %arg4: memref<7x128x128xbf16, #tpu.memory_space<vmem>>, %arg5: memref<256x128xbf16, #tpu.memory_space<vmem>>, %arg6: memref<5x128xf32, #tpu.memory_space<vmem>>, %arg7: memref<2x16x128xf32, #tpu.memory_space<vmem>>, %arg8: memref<56x64xf32, #tpu.memory_space<vmem>>, %arg9: memref<56x128xf32, #tpu.memory_space<vmem>>, %arg10: memref<56x128xf32, #tpu.memory_space<vmem>>) attributes {dimension_semantics = [#tpu.dimension_semantics<parallel>], iteration_bounds = array<i64: 1>, scalar_prefetch = 0 : i64, scratch_operands = 3 : i64, tpu.core_type = #tpu.core_type<tc>, window_params = [{transform_indices = @transform_0, window_bounds = array<i64: 2, 16, 64>}, {pipeline_mode = #tpu.pipeline_mode<synchronous>, transform_indices = @transform_1, window_bounds = array<i64: 7, 64, 256>}, {pipeline_mode = #tpu.pipeline_mode<synchronous>, transform_indices = @transform_2, window_bounds = array<i64: 3, 128, 128>}, {pipeline_mode = #tpu.pipeline_mode<synchronous>, transform_indices = @transform_3, window_bounds = array<i64: 7, 128, 128>}, {pipeline_mode = #tpu.pipeline_mode<synchronous>, transform_indices = @transform_4, window_bounds = array<i64: 256, 128>}, {pipeline_mode = #tpu.pipeline_mode<synchronous>, transform_indices = @transform_5, window_bounds = array<i64: 5, 128>}, {transform_indices = @transform_6, window_bounds = array<i64: 2, 16, 128>}]} {
    %cst = arith.constant 0.000000e+00 : f32
    %0 = vector.broadcast %cst : f32 to vector<8x64xf32>
    %cst_0 = arith.constant 0.000000e+00 : f32
    %1 = vector.broadcast %cst_0 : f32 to vector<8x128xf32>
    %c0 = arith.constant 0 : index
    %c0_1 = arith.constant 0 : index
    %2 = vector.load %arg8[%c0, %c0_1] : memref<56x64xf32, #tpu.memory_space<vmem>>, vector<8x64xf32>
    tpu.vector_store %arg8[%c0, %c0_1], %0 {strides = array<i32>} : memref<56x64xf32, #tpu.memory_space<vmem>>, vector<8x64xf32>,
    %c0_2 = arith.constant 0 : index
    %c0_3 = arith.constant 0 : index
    %3 = vector.load %arg9[%c0_2, %c0_3] : memref<56x128xf32, #tpu.memory_space<vmem>>, vector<8x128xf32>
    tpu.vector_store %arg9[%c0_2, %c0_3], %1 {strides = array<i32>} : memref<56x128xf32, #tpu.memory_space<vmem>>, vector<8x128xf32>,
    %c0_4 = arith.constant 0 : index
    %c0_5 = arith.constant 0 : index
    %4 = vector.load %arg10[%c0_4, %c0_5] : memref<56x128xf32, #tpu.memory_space<vmem>>, vector<8x128xf32>
    tpu.vector_store %arg10[%c0_4, %c0_5], %1 {strides = array<i32>} : memref<56x128xf32, #tpu.memory_space<vmem>>, vector<8x128xf32>,
    %c24 = arith.constant 24 : index
    %c0_6 = arith.constant 0 : index
    %5 = vector.load %arg8[%c24, %c0_6] : memref<56x64xf32, #tpu.memory_space<vmem>>, vector<8x64xf32>
    tpu.vector_store %arg8[%c24, %c0_6], %0 {strides = array<i32>} : memref<56x64xf32, #tpu.memory_space<vmem>>, vector<8x64xf32>,
    %c24_7 = arith.constant 24 : index
    %c0_8 = arith.constant 0 : index
    %6 = vector.load %arg9[%c24_7, %c0_8] : memref<56x128xf32, #tpu.memory_space<vmem>>, vector<8x128xf32>
    tpu.vector_store %arg9[%c24_7, %c0_8], %1 {strides = array<i32>} : memref<56x128xf32, #tpu.memory_space<vmem>>, vector<8x128xf32>,
    %c24_9 = arith.constant 24 : index
    %c0_10 = arith.constant 0 : index
    %7 = vector.load %arg10[%c24_9, %c0_10] : memref<56x128xf32, #tpu.memory_space<vmem>>, vector<8x128xf32>
    tpu.vector_store %arg10[%c24_9, %c0_10], %1 {strides = array<i32>} : memref<56x128xf32, #tpu.memory_space<vmem>>, vector<8x128xf32>,
    %c48 = arith.constant 48 : index
    %c0_11 = arith.constant 0 : index
    %8 = vector.load %arg8[%c48, %c0_11] : memref<56x64xf32, #tpu.memory_space<vmem>>, vector<8x64xf32>
    tpu.vector_store %arg8[%c48, %c0_11], %0 {strides = array<i32>} : memref<56x64xf32, #tpu.memory_space<vmem>>, vector<8x64xf32>,
    %c48_12 = arith.constant 48 : index
    %c0_13 = arith.constant 0 : index
    %9 = vector.load %arg9[%c48_12, %c0_13] : memref<56x128xf32, #tpu.memory_space<vmem>>, vector<8x128xf32>
    tpu.vector_store %arg9[%c48_12, %c0_13], %1 {strides = array<i32>} : memref<56x128xf32, #tpu.memory_space<vmem>>, vector<8x128xf32>,
    %c48_14 = arith.constant 48 : index
    %c0_15 = arith.constant 0 : index
    %10 = vector.load %arg10[%c48_14, %c0_15] : memref<56x128xf32, #tpu.memory_space<vmem>>, vector<8x128xf32>
    tpu.vector_store %arg10[%c48_14, %c0_15], %1 {strides = array<i32>} : memref<56x128xf32, #tpu.memory_space<vmem>>, vector<8x128xf32>,
    %c0_16 = arith.constant 0 : index
    %c0_17 = arith.constant 0 : index
    %c0_18 = arith.constant 0 : index
    %11 = vector.load %arg1[%c0_16, %c0_17, %c0_18] : memref<2x16x64xf32, #tpu.memory_space<vmem>>, vector<1x16x64xf32>
    %12 = vector.shape_cast %11 : vector<1x16x64xf32> to vector<16x64xf32>
    %c8 = arith.constant 8 : index
    %c0_19 = arith.constant 0 : index
    %13 = vector.load %arg8[%c8, %c0_19] : memref<56x64xf32, #tpu.memory_space<vmem>>, vector<16x64xf32>
    tpu.vector_store %arg8[%c8, %c0_19], %12 {strides = array<i32>} : memref<56x64xf32, #tpu.memory_space<vmem>>, vector<16x64xf32>,
    %c1 = arith.constant 1 : index
    %c0_20 = arith.constant 0 : index
    %c0_21 = arith.constant 0 : index
    %14 = vector.load %arg1[%c1, %c0_20, %c0_21] : memref<2x16x64xf32, #tpu.memory_space<vmem>>, vector<1x16x64xf32>
    %15 = vector.shape_cast %14 : vector<1x16x64xf32> to vector<16x64xf32>
    %c32 = arith.constant 32 : index
    %c0_22 = arith.constant 0 : index
    %16 = vector.load %arg8[%c32, %c0_22] : memref<56x64xf32, #tpu.memory_space<vmem>>, vector<16x64xf32>
    tpu.vector_store %arg8[%c32, %c0_22], %15 {strides = array<i32>} : memref<56x64xf32, #tpu.memory_space<vmem>>, vector<16x64xf32>,
    %cst_23 = arith.constant 0.000000e+00 : f32
    %17 = vector.broadcast %cst_23 : f32 to vector<40x256xf32>
    %c5 = arith.constant 5 : index
    %c0_24 = arith.constant 0 : index
    %18 = vector.load %arg8[%c5, %c0_24] : memref<56x64xf32, #tpu.memory_space<vmem>>, vector<40x64xf32>
    %19 = arith.truncf %18 : vector<40x64xf32> to vector<40x64xbf16>
    %c0_25 = arith.constant 0 : index
    %c0_26 = arith.constant 0 : index
    %c0_27 = arith.constant 0 : index
    %20 = vector.load %arg2[%c0_25, %c0_26, %c0_27] : memref<7x64x256xbf16, #tpu.memory_space<vmem>>, vector<1x64x256xbf16>
    %21 = vector.shape_cast %20 : vector<1x64x256xbf16> to vector<64x256xbf16>
    %cst_28 = arith.constant dense<0.000000e+00> : vector<40x256xf32>
    %22 = tpu.matmul %19, %21, %cst_28 {dimension_numbers = #tpu.dot_dimension_numbers<[1], [0], [0], [1], [0, 0, 1, 1], [], []>} : vector<40x64xbf16>, vector<64x256xbf16>, vector<40x256xf32> -> vector<40x256xf32>
    %23 = arith.addf %17, %22 : vector<40x256xf32>
    %c6 = arith.constant 6 : index
    %c0_29 = arith.constant 0 : index
    %24 = vector.load %arg8[%c6, %c0_29] : memref<56x64xf32, #tpu.memory_space<vmem>>, vector<40x64xf32>
    %25 = arith.truncf %24 : vector<40x64xf32> to vector<40x64xbf16>
    %c1_30 = arith.constant 1 : index
    %c0_31 = arith.constant 0 : index
    %c0_32 = arith.constant 0 : index
    %26 = vector.load %arg2[%c1_30, %c0_31, %c0_32] : memref<7x64x256xbf16, #tpu.memory_space<vmem>>, vector<1x64x256xbf16>
    %27 = vector.shape_cast %26 : vector<1x64x256xbf16> to vector<64x256xbf16>
    %cst_33 = arith.constant dense<0.000000e+00> : vector<40x256xf32>
    %28 = tpu.matmul %25, %27, %cst_33 {dimension_numbers = #tpu.dot_dimension_numbers<[1], [0], [0], [1], [0, 0, 1, 1], [], []>} : vector<40x64xbf16>, vector<64x256xbf16>, vector<40x256xf32> -> vector<40x256xf32>
    %29 = arith.addf %23, %28 : vector<40x256xf32>
    %c7 = arith.constant 7 : index
    %c0_34 = arith.constant 0 : index
    %30 = vector.load %arg8[%c7, %c0_34] : memref<56x64xf32, #tpu.memory_space<vmem>>, vector<40x64xf32>
    %31 = arith.truncf %30 : vector<40x64xf32> to vector<40x64xbf16>
    %c2 = arith.constant 2 : index
    %c0_35 = arith.constant 0 : index
    %c0_36 = arith.constant 0 : index
    %32 = vector.load %arg2[%c2, %c0_35, %c0_36] : memref<7x64x256xbf16, #tpu.memory_space<vmem>>, vector<1x64x256xbf16>
    %33 = vector.shape_cast %32 : vector<1x64x256xbf16> to vector<64x256xbf16>
    %cst_37 = arith.constant dense<0.000000e+00> : vector<40x256xf32>
    %34 = tpu.matmul %31, %33, %cst_37 {dimension_numbers = #tpu.dot_dimension_numbers<[1], [0], [0], [1], [0, 0, 1, 1], [], []>} : vector<40x64xbf16>, vector<64x256xbf16>, vector<40x256xf32> -> vector<40x256xf32>
    %35 = arith.addf %29, %34 : vector<40x256xf32>
    %c8_38 = arith.constant 8 : index
    %c0_39 = arith.constant 0 : index
    %36 = vector.load %arg8[%c8_38, %c0_39] : memref<56x64xf32, #tpu.memory_space<vmem>>, vector<40x64xf32>
    %37 = arith.truncf %36 : vector<40x64xf32> to vector<40x64xbf16>
    %c3 = arith.constant 3 : index
    %c0_40 = arith.constant 0 : index
    %c0_41 = arith.constant 0 : index
    %38 = vector.load %arg2[%c3, %c0_40, %c0_41] : memref<7x64x256xbf16, #tpu.memory_space<vmem>>, vector<1x64x256xbf16>
    %39 = vector.shape_cast %38 : vector<1x64x256xbf16> to vector<64x256xbf16>
    %cst_42 = arith.constant dense<0.000000e+00> : vector<40x256xf32>
    %40 = tpu.matmul %37, %39, %cst_42 {dimension_numbers = #tpu.dot_dimension_numbers<[1], [0], [0], [1], [0, 0, 1, 1], [], []>} : vector<40x64xbf16>, vector<64x256xbf16>, vector<40x256xf32> -> vector<40x256xf32>
    %41 = arith.addf %35, %40 : vector<40x256xf32>
    %c9 = arith.constant 9 : index
    %c0_43 = arith.constant 0 : index
    %42 = vector.load %arg8[%c9, %c0_43] : memref<56x64xf32, #tpu.memory_space<vmem>>, vector<40x64xf32>
    %43 = arith.truncf %42 : vector<40x64xf32> to vector<40x64xbf16>
    %c4 = arith.constant 4 : index
    %c0_44 = arith.constant 0 : index
    %c0_45 = arith.constant 0 : index
    %44 = vector.load %arg2[%c4, %c0_44, %c0_45] : memref<7x64x256xbf16, #tpu.memory_space<vmem>>, vector<1x64x256xbf16>
    %45 = vector.shape_cast %44 : vector<1x64x256xbf16> to vector<64x256xbf16>
    %cst_46 = arith.constant dense<0.000000e+00> : vector<40x256xf32>
    %46 = tpu.matmul %43, %45, %cst_46 {dimension_numbers = #tpu.dot_dimension_numbers<[1], [0], [0], [1], [0, 0, 1, 1], [], []>} : vector<40x64xbf16>, vector<64x256xbf16>, vector<40x256xf32> -> vector<40x256xf32>
    %47 = arith.addf %41, %46 : vector<40x256xf32>
    %c10 = arith.constant 10 : index
    %c0_47 = arith.constant 0 : index
    %48 = vector.load %arg8[%c10, %c0_47] : memref<56x64xf32, #tpu.memory_space<vmem>>, vector<40x64xf32>
    %49 = arith.truncf %48 : vector<40x64xf32> to vector<40x64xbf16>
    %c5_48 = arith.constant 5 : index
    %c0_49 = arith.constant 0 : index
    %c0_50 = arith.constant 0 : index
    %50 = vector.load %arg2[%c5_48, %c0_49, %c0_50] : memref<7x64x256xbf16, #tpu.memory_space<vmem>>, vector<1x64x256xbf16>
    %51 = vector.shape_cast %50 : vector<1x64x256xbf16> to vector<64x256xbf16>
    %cst_51 = arith.constant dense<0.000000e+00> : vector<40x256xf32>
    %52 = tpu.matmul %49, %51, %cst_51 {dimension_numbers = #tpu.dot_dimension_numbers<[1], [0], [0], [1], [0, 0, 1, 1], [], []>} : vector<40x64xbf16>, vector<64x256xbf16>, vector<40x256xf32> -> vector<40x256xf32>
    %53 = arith.addf %47, %52 : vector<40x256xf32>
    %c11 = arith.constant 11 : index
    %c0_52 = arith.constant 0 : index
    %54 = vector.load %arg8[%c11, %c0_52] : memref<56x64xf32, #tpu.memory_space<vmem>>, vector<40x64xf32>
    %55 = arith.truncf %54 : vector<40x64xf32> to vector<40x64xbf16>
    %c6_53 = arith.constant 6 : index
    %c0_54 = arith.constant 0 : index
    %c0_55 = arith.constant 0 : index
    %56 = vector.load %arg2[%c6_53, %c0_54, %c0_55] : memref<7x64x256xbf16, #tpu.memory_space<vmem>>, vector<1x64x256xbf16>
    %57 = vector.shape_cast %56 : vector<1x64x256xbf16> to vector<64x256xbf16>
    %cst_56 = arith.constant dense<0.000000e+00> : vector<40x256xf32>
    %58 = tpu.matmul %55, %57, %cst_56 {dimension_numbers = #tpu.dot_dimension_numbers<[1], [0], [0], [1], [0, 0, 1, 1], [], []>} : vector<40x64xbf16>, vector<64x256xbf16>, vector<40x256xf32> -> vector<40x256xf32>
    %59 = arith.addf %53, %58 : vector<40x256xf32>
    %60 = vector.extract_strided_slice %59 {offsets = [0, 0], sizes = [40, 128], strides = [1, 1]} : vector<40x256xf32> to vector<40x128xf32>
    %c0_57 = arith.constant 0 : index
    %c0_58 = arith.constant 0 : index
    %61 = vector.load %arg6[%c0_57, %c0_58] : memref<5x128xf32, #tpu.memory_space<vmem>>, vector<1x128xf32>
    %62 = vector.broadcast %61 : vector<1x128xf32> to vector<40x128xf32>
    %63 = arith.addf %60, %62 : vector<40x128xf32>
    %cst_59 = arith.constant 0.000000e+00 : f32
    %64 = vector.broadcast %cst_59 : f32 to vector<40x128xf32>
    %65 = arith.maximumf %63, %64 : vector<40x128xf32>
    %66 = vector.extract_strided_slice %59 {offsets = [0, 128], sizes = [40, 128], strides = [1, 1]} : vector<40x256xf32> to vector<40x128xf32>
    %c2_60 = arith.constant 2 : index
    %c0_61 = arith.constant 0 : index
    %67 = vector.load %arg6[%c2_60, %c0_61] : memref<5x128xf32, #tpu.memory_space<vmem>>, vector<1x128xf32>
    %68 = vector.broadcast %67 : vector<1x128xf32> to vector<40x128xf32>
    %69 = arith.addf %66, %68 : vector<40x128xf32>
    %cst_62 = arith.constant 0.000000e+00 : f32
    %70 = vector.broadcast %cst_62 : f32 to vector<40x128xf32>
    %71 = arith.maximumf %69, %70 : vector<40x128xf32>
    %72 = vector.extract_strided_slice %65 {offsets = [0, 0], sizes = [16, 128], strides = [1, 1]} : vector<40x128xf32> to vector<16x128xf32>
    %c8_63 = arith.constant 8 : index
    %c0_64 = arith.constant 0 : index
    %73 = vector.load %arg9[%c8_63, %c0_64] : memref<56x128xf32, #tpu.memory_space<vmem>>, vector<16x128xf32>
    tpu.vector_store %arg9[%c8_63, %c0_64], %72 {strides = array<i32>} : memref<56x128xf32, #tpu.memory_space<vmem>>, vector<16x128xf32>,
    %74 = vector.extract_strided_slice %71 {offsets = [0, 0], sizes = [16, 128], strides = [1, 1]} : vector<40x128xf32> to vector<16x128xf32>
    %c8_65 = arith.constant 8 : index
    %c0_66 = arith.constant 0 : index
    %75 = vector.load %arg10[%c8_65, %c0_66] : memref<56x128xf32, #tpu.memory_space<vmem>>, vector<16x128xf32>
    tpu.vector_store %arg10[%c8_65, %c0_66], %74 {strides = array<i32>} : memref<56x128xf32, #tpu.memory_space<vmem>>, vector<16x128xf32>,
    %76 = vector.extract_strided_slice %65 {offsets = [24, 0], sizes = [16, 128], strides = [1, 1]} : vector<40x128xf32> to vector<16x128xf32>
    %c32_67 = arith.constant 32 : index
    %c0_68 = arith.constant 0 : index
    %77 = vector.load %arg9[%c32_67, %c0_68] : memref<56x128xf32, #tpu.memory_space<vmem>>, vector<16x128xf32>
    tpu.vector_store %arg9[%c32_67, %c0_68], %76 {strides = array<i32>} : memref<56x128xf32, #tpu.memory_space<vmem>>, vector<16x128xf32>,
    %78 = vector.extract_strided_slice %71 {offsets = [24, 0], sizes = [16, 128], strides = [1, 1]} : vector<40x128xf32> to vector<16x128xf32>
    %c32_69 = arith.constant 32 : index
    %c0_70 = arith.constant 0 : index
    %79 = vector.load %arg10[%c32_69, %c0_70] : memref<56x128xf32, #tpu.memory_space<vmem>>, vector<16x128xf32>
    tpu.vector_store %arg10[%c32_69, %c0_70], %78 {strides = array<i32>} : memref<56x128xf32, #tpu.memory_space<vmem>>, vector<16x128xf32>,
    %c1_71 = arith.constant 1 : index
    %c0_72 = arith.constant 0 : index
    %80 = vector.load %arg6[%c1_71, %c0_72] : memref<5x128xf32, #tpu.memory_space<vmem>>, vector<1x128xf32>
    %cst_73 = arith.constant 0.000000e+00 : f32
    %81 = vector.broadcast %cst_73 : f32 to vector<40x128xf32>
    %c7_74 = arith.constant 7 : index
    %c0_75 = arith.constant 0 : index
    %82 = vector.load %arg9[%c7_74, %c0_75] : memref<56x128xf32, #tpu.memory_space<vmem>>, vector<40x128xf32>
    %83 = arith.truncf %82 : vector<40x128xf32> to vector<40x128xbf16>
    %c0_76 = arith.constant 0 : index
    %c0_77 = arith.constant 0 : index
    %c0_78 = arith.constant 0 : index
    %84 = vector.load %arg3[%c0_76, %c0_77, %c0_78] : memref<3x128x128xbf16, #tpu.memory_space<vmem>>, vector<1x128x128xbf16>
    %85 = vector.shape_cast %84 : vector<1x128x128xbf16> to vector<128x128xbf16>
    %cst_79 = arith.constant dense<0.000000e+00> : vector<40x128xf32>
    %86 = tpu.matmul %83, %85, %cst_79 {dimension_numbers = #tpu.dot_dimension_numbers<[1], [0], [0], [1], [0, 0, 1, 1], [], []>} : vector<40x128xbf16>, vector<128x128xbf16>, vector<40x128xf32> -> vector<40x128xf32>
    %87 = arith.addf %81, %86 : vector<40x128xf32>
    %c8_80 = arith.constant 8 : index
    %c0_81 = arith.constant 0 : index
    %88 = vector.load %arg9[%c8_80, %c0_81] : memref<56x128xf32, #tpu.memory_space<vmem>>, vector<40x128xf32>
    %89 = arith.truncf %88 : vector<40x128xf32> to vector<40x128xbf16>
    %c1_82 = arith.constant 1 : index
    %c0_83 = arith.constant 0 : index
    %c0_84 = arith.constant 0 : index
    %90 = vector.load %arg3[%c1_82, %c0_83, %c0_84] : memref<3x128x128xbf16, #tpu.memory_space<vmem>>, vector<1x128x128xbf16>
    %91 = vector.shape_cast %90 : vector<1x128x128xbf16> to vector<128x128xbf16>
    %cst_85 = arith.constant dense<0.000000e+00> : vector<40x128xf32>
    %92 = tpu.matmul %89, %91, %cst_85 {dimension_numbers = #tpu.dot_dimension_numbers<[1], [0], [0], [1], [0, 0, 1, 1], [], []>} : vector<40x128xbf16>, vector<128x128xbf16>, vector<40x128xf32> -> vector<40x128xf32>
    %93 = arith.addf %87, %92 : vector<40x128xf32>
    %c9_86 = arith.constant 9 : index
    %c0_87 = arith.constant 0 : index
    %94 = vector.load %arg9[%c9_86, %c0_87] : memref<56x128xf32, #tpu.memory_space<vmem>>, vector<40x128xf32>
    %95 = arith.truncf %94 : vector<40x128xf32> to vector<40x128xbf16>
    %c2_88 = arith.constant 2 : index
    %c0_89 = arith.constant 0 : index
    %c0_90 = arith.constant 0 : index
    %96 = vector.load %arg3[%c2_88, %c0_89, %c0_90] : memref<3x128x128xbf16, #tpu.memory_space<vmem>>, vector<1x128x128xbf16>
    %97 = vector.shape_cast %96 : vector<1x128x128xbf16> to vector<128x128xbf16>
    %cst_91 = arith.constant dense<0.000000e+00> : vector<40x128xf32>
    %98 = tpu.matmul %95, %97, %cst_91 {dimension_numbers = #tpu.dot_dimension_numbers<[1], [0], [0], [1], [0, 0, 1, 1], [], []>} : vector<40x128xbf16>, vector<128x128xbf16>, vector<40x128xf32> -> vector<40x128xf32>
    %99 = arith.addf %93, %98 : vector<40x128xf32>
    %100 = vector.broadcast %80 : vector<1x128xf32> to vector<40x128xf32>
    %101 = arith.addf %99, %100 : vector<40x128xf32>
    %cst_92 = arith.constant 0.000000e+00 : f32
    %102 = vector.broadcast %cst_92 : f32 to vector<40x128xf32>
    %103 = arith.maximumf %101, %102 : vector<40x128xf32>
    %c3_93 = arith.constant 3 : index
    %c0_94 = arith.constant 0 : index
    %104 = vector.load %arg6[%c3_93, %c0_94] : memref<5x128xf32, #tpu.memory_space<vmem>>, vector<1x128xf32>
    %cst_95 = arith.constant 0.000000e+00 : f32
    %105 = vector.broadcast %cst_95 : f32 to vector<40x128xf32>
    %c5_96 = arith.constant 5 : index
    %c0_97 = arith.constant 0 : index
    %106 = vector.load %arg10[%c5_96, %c0_97] : memref<56x128xf32, #tpu.memory_space<vmem>>, vector<40x128xf32>
    %107 = arith.truncf %106 : vector<40x128xf32> to vector<40x128xbf16>
    %c0_98 = arith.constant 0 : index
    %c0_99 = arith.constant 0 : index
    %c0_100 = arith.constant 0 : index
    %108 = vector.load %arg4[%c0_98, %c0_99, %c0_100] : memref<7x128x128xbf16, #tpu.memory_space<vmem>>, vector<1x128x128xbf16>
    %109 = vector.shape_cast %108 : vector<1x128x128xbf16> to vector<128x128xbf16>
    %cst_101 = arith.constant dense<0.000000e+00> : vector<40x128xf32>
    %110 = tpu.matmul %107, %109, %cst_101 {dimension_numbers = #tpu.dot_dimension_numbers<[1], [0], [0], [1], [0, 0, 1, 1], [], []>} : vector<40x128xbf16>, vector<128x128xbf16>, vector<40x128xf32> -> vector<40x128xf32>
    %111 = arith.addf %105, %110 : vector<40x128xf32>
    %c6_102 = arith.constant 6 : index
    %c0_103 = arith.constant 0 : index
    %112 = vector.load %arg10[%c6_102, %c0_103] : memref<56x128xf32, #tpu.memory_space<vmem>>, vector<40x128xf32>
    %113 = arith.truncf %112 : vector<40x128xf32> to vector<40x128xbf16>
    %c1_104 = arith.constant 1 : index
    %c0_105 = arith.constant 0 : index
    %c0_106 = arith.constant 0 : index
    %114 = vector.load %arg4[%c1_104, %c0_105, %c0_106] : memref<7x128x128xbf16, #tpu.memory_space<vmem>>, vector<1x128x128xbf16>
    %115 = vector.shape_cast %114 : vector<1x128x128xbf16> to vector<128x128xbf16>
    %cst_107 = arith.constant dense<0.000000e+00> : vector<40x128xf32>
    %116 = tpu.matmul %113, %115, %cst_107 {dimension_numbers = #tpu.dot_dimension_numbers<[1], [0], [0], [1], [0, 0, 1, 1], [], []>} : vector<40x128xbf16>, vector<128x128xbf16>, vector<40x128xf32> -> vector<40x128xf32>
    %117 = arith.addf %111, %116 : vector<40x128xf32>
    %c7_108 = arith.constant 7 : index
    %c0_109 = arith.constant 0 : index
    %118 = vector.load %arg10[%c7_108, %c0_109] : memref<56x128xf32, #tpu.memory_space<vmem>>, vector<40x128xf32>
    %119 = arith.truncf %118 : vector<40x128xf32> to vector<40x128xbf16>
    %c2_110 = arith.constant 2 : index
    %c0_111 = arith.constant 0 : index
    %c0_112 = arith.constant 0 : index
    %120 = vector.load %arg4[%c2_110, %c0_111, %c0_112] : memref<7x128x128xbf16, #tpu.memory_space<vmem>>, vector<1x128x128xbf16>
    %121 = vector.shape_cast %120 : vector<1x128x128xbf16> to vector<128x128xbf16>
    %cst_113 = arith.constant dense<0.000000e+00> : vector<40x128xf32>
    %122 = tpu.matmul %119, %121, %cst_113 {dimension_numbers = #tpu.dot_dimension_numbers<[1], [0], [0], [1], [0, 0, 1, 1], [], []>} : vector<40x128xbf16>, vector<128x128xbf16>, vector<40x128xf32> -> vector<40x128xf32>
    %123 = arith.addf %117, %122 : vector<40x128xf32>
    %c8_114 = arith.constant 8 : index
    %c0_115 = arith.constant 0 : index
    %124 = vector.load %arg10[%c8_114, %c0_115] : memref<56x128xf32, #tpu.memory_space<vmem>>, vector<40x128xf32>
    %125 = arith.truncf %124 : vector<40x128xf32> to vector<40x128xbf16>
    %c3_116 = arith.constant 3 : index
    %c0_117 = arith.constant 0 : index
    %c0_118 = arith.constant 0 : index
    %126 = vector.load %arg4[%c3_116, %c0_117, %c0_118] : memref<7x128x128xbf16, #tpu.memory_space<vmem>>, vector<1x128x128xbf16>
    %127 = vector.shape_cast %126 : vector<1x128x128xbf16> to vector<128x128xbf16>
    %cst_119 = arith.constant dense<0.000000e+00> : vector<40x128xf32>
    %128 = tpu.matmul %125, %127, %cst_119 {dimension_numbers = #tpu.dot_dimension_numbers<[1], [0], [0], [1], [0, 0, 1, 1], [], []>} : vector<40x128xbf16>, vector<128x128xbf16>, vector<40x128xf32> -> vector<40x128xf32>
    %129 = arith.addf %123, %128 : vector<40x128xf32>
    %c9_120 = arith.constant 9 : index
    %c0_121 = arith.constant 0 : index
    %130 = vector.load %arg10[%c9_120, %c0_121] : memref<56x128xf32, #tpu.memory_space<vmem>>, vector<40x128xf32>
    %131 = arith.truncf %130 : vector<40x128xf32> to vector<40x128xbf16>
    %c4_122 = arith.constant 4 : index
    %c0_123 = arith.constant 0 : index
    %c0_124 = arith.constant 0 : index
    %132 = vector.load %arg4[%c4_122, %c0_123, %c0_124] : memref<7x128x128xbf16, #tpu.memory_space<vmem>>, vector<1x128x128xbf16>
    %133 = vector.shape_cast %132 : vector<1x128x128xbf16> to vector<128x128xbf16>
    %cst_125 = arith.constant dense<0.000000e+00> : vector<40x128xf32>
    %134 = tpu.matmul %131, %133, %cst_125 {dimension_numbers = #tpu.dot_dimension_numbers<[1], [0], [0], [1], [0, 0, 1, 1], [], []>} : vector<40x128xbf16>, vector<128x128xbf16>, vector<40x128xf32> -> vector<40x128xf32>
    %135 = arith.addf %129, %134 : vector<40x128xf32>
    %c10_126 = arith.constant 10 : index
    %c0_127 = arith.constant 0 : index
    %136 = vector.load %arg10[%c10_126, %c0_127] : memref<56x128xf32, #tpu.memory_space<vmem>>, vector<40x128xf32>
    %137 = arith.truncf %136 : vector<40x128xf32> to vector<40x128xbf16>
    %c5_128 = arith.constant 5 : index
    %c0_129 = arith.constant 0 : index
    %c0_130 = arith.constant 0 : index
    %138 = vector.load %arg4[%c5_128, %c0_129, %c0_130] : memref<7x128x128xbf16, #tpu.memory_space<vmem>>, vector<1x128x128xbf16>
    %139 = vector.shape_cast %138 : vector<1x128x128xbf16> to vector<128x128xbf16>
    %cst_131 = arith.constant dense<0.000000e+00> : vector<40x128xf32>
    %140 = tpu.matmul %137, %139, %cst_131 {dimension_numbers = #tpu.dot_dimension_numbers<[1], [0], [0], [1], [0, 0, 1, 1], [], []>} : vector<40x128xbf16>, vector<128x128xbf16>, vector<40x128xf32> -> vector<40x128xf32>
    %141 = arith.addf %135, %140 : vector<40x128xf32>
    %c11_132 = arith.constant 11 : index
    %c0_133 = arith.constant 0 : index
    %142 = vector.load %arg10[%c11_132, %c0_133] : memref<56x128xf32, #tpu.memory_space<vmem>>, vector<40x128xf32>
    %143 = arith.truncf %142 : vector<40x128xf32> to vector<40x128xbf16>
    %c6_134 = arith.constant 6 : index
    %c0_135 = arith.constant 0 : index
    %c0_136 = arith.constant 0 : index
    %144 = vector.load %arg4[%c6_134, %c0_135, %c0_136] : memref<7x128x128xbf16, #tpu.memory_space<vmem>>, vector<1x128x128xbf16>
    %145 = vector.shape_cast %144 : vector<1x128x128xbf16> to vector<128x128xbf16>
    %cst_137 = arith.constant dense<0.000000e+00> : vector<40x128xf32>
    %146 = tpu.matmul %143, %145, %cst_137 {dimension_numbers = #tpu.dot_dimension_numbers<[1], [0], [0], [1], [0, 0, 1, 1], [], []>} : vector<40x128xbf16>, vector<128x128xbf16>, vector<40x128xf32> -> vector<40x128xf32>
    %147 = arith.addf %141, %146 : vector<40x128xf32>
    %148 = vector.broadcast %104 : vector<1x128xf32> to vector<40x128xf32>
    %149 = arith.addf %147, %148 : vector<40x128xf32>
    %cst_138 = arith.constant 0.000000e+00 : f32
    %150 = vector.broadcast %cst_138 : f32 to vector<40x128xf32>
    %151 = arith.maximumf %149, %150 : vector<40x128xf32>
    %152 = tpu.concatenate %103, %151 in 1 : vector<40x128xf32>, vector<40x128xf32> -> vector<40x256xf32>
    %153 = arith.truncf %152 : vector<40x256xf32> to vector<40x256xbf16>
    %c0_139 = arith.constant 0 : index
    %c0_140 = arith.constant 0 : index
    %154 = vector.load %arg5[%c0_139, %c0_140] : memref<256x128xbf16, #tpu.memory_space<vmem>>, vector<256x128xbf16>
    %cst_141 = arith.constant dense<0.000000e+00> : vector<40x128xf32>
    %155 = tpu.matmul %153, %154, %cst_141 {dimension_numbers = #tpu.dot_dimension_numbers<[1], [0], [0], [1], [0, 0, 1, 1], [], []>} : vector<40x256xbf16>, vector<256x128xbf16>, vector<40x128xf32> -> vector<40x128xf32>
    %c4_142 = arith.constant 4 : index
    %c0_143 = arith.constant 0 : index
    %156 = vector.load %arg6[%c4_142, %c0_143] : memref<5x128xf32, #tpu.memory_space<vmem>>, vector<1x128xf32>
    %157 = vector.broadcast %156 : vector<1x128xf32> to vector<40x128xf32>
    %158 = arith.addf %155, %157 : vector<40x128xf32>
    %159 = vector.extract_strided_slice %158 {offsets = [0, 0], sizes = [16, 128], strides = [1, 1]} : vector<40x128xf32> to vector<16x128xf32>
    %c0_144 = arith.constant 0 : index
    %c0_145 = arith.constant 0 : index
    %c0_146 = arith.constant 0 : index
    %160 = vector.load %arg7[%c0_144, %c0_145, %c0_146] : memref<2x16x128xf32, #tpu.memory_space<vmem>>, vector<1x16x128xf32>
    %161 = vector.shape_cast %160 : vector<1x16x128xf32> to vector<16x128xf32>
    %162 = vector.shape_cast %159 : vector<16x128xf32> to vector<1x16x128xf32>
    tpu.vector_store %arg7[%c0_144, %c0_145, %c0_146], %162 {strides = array<i32>} : memref<2x16x128xf32, #tpu.memory_space<vmem>>, vector<1x16x128xf32>,
    %163 = vector.extract_strided_slice %158 {offsets = [24, 0], sizes = [16, 128], strides = [1, 1]} : vector<40x128xf32> to vector<16x128xf32>
    %c1_147 = arith.constant 1 : index
    %c0_148 = arith.constant 0 : index
    %c0_149 = arith.constant 0 : index
    %164 = vector.load %arg7[%c1_147, %c0_148, %c0_149] : memref<2x16x128xf32, #tpu.memory_space<vmem>>, vector<1x16x128xf32>
    %165 = vector.shape_cast %164 : vector<1x16x128xf32> to vector<16x128xf32>
    %166 = vector.shape_cast %163 : vector<16x128xf32> to vector<1x16x128xf32>
    tpu.vector_store %arg7[%c1_147, %c0_148, %c0_149], %166 {strides = array<i32>} : memref<2x16x128xf32, #tpu.memory_space<vmem>>, vector<1x16x128xf32>,
    return
  }
  func.func @transform_0(%arg0: i32) -> (i32, i32, i32) {
    %c0_i32 = arith.constant 0 : i32
    %c0_i32_0 = arith.constant 0 : i32
    %c0_i32_1 = arith.constant 0 : i32
    return %arg0, %c0_i32, %c0_i32_0 : i32, i32, i32
  }
  func.func @transform_1(%arg0: i32) -> (i32, i32, i32) {
    %c0_i32 = arith.constant 0 : i32
    %c0_i32_0 = arith.constant 0 : i32
    %c0_i32_1 = arith.constant 0 : i32
    %c0_i32_2 = arith.constant 0 : i32
    return %c0_i32, %c0_i32_0, %c0_i32_1 : i32, i32, i32
  }
  func.func @transform_2(%arg0: i32) -> (i32, i32, i32) {
    %c0_i32 = arith.constant 0 : i32
    %c0_i32_0 = arith.constant 0 : i32
    %c0_i32_1 = arith.constant 0 : i32
    %c0_i32_2 = arith.constant 0 : i32
    return %c0_i32, %c0_i32_0, %c0_i32_1 : i32, i32, i32
  }
  func.func @transform_3(%arg0: i32) -> (i32, i32, i32) {
    %c0_i32 = arith.constant 0 : i32
    %c0_i32_0 = arith.constant 0 : i32
    %c0_i32_1 = arith.constant 0 : i32
    %c0_i32_2 = arith.constant 0 : i32
    return %c0_i32, %c0_i32_0, %c0_i32_1 : i32, i32, i32
  }
  func.func @transform_4(%arg0: i32) -> (i32, i32) {
    %c0_i32 = arith.constant 0 : i32
    %c0_i32_0 = arith.constant 0 : i32
    %c0_i32_1 = arith.constant 0 : i32
    return %c0_i32, %c0_i32_0 : i32, i32
  }
  func.func @transform_5(%arg0: i32) -> (i32, i32) {
    %c0_i32 = arith.constant 0 : i32
    %c0_i32_0 = arith.constant 0 : i32
    %c0_i32_1 = arith.constant 0 : i32
    return %c0_i32, %c0_i32_0 : i32, i32
  }
  func.func @transform_6(%arg0: i32) -> (i32, i32, i32) {
    %c0_i32 = arith.constant 0 : i32
    %c0_i32_0 = arith.constant 0 : i32
    %c0_i32_1 = arith.constant 0 : i32
    return %arg0, %c0_i32, %c0_i32_0 : i32, i32, i32
  }
}

</mosaic_0001>

<bundles_post_ra>
// kernel: ms_unet_conv_block.1
= control target key start
LH: loop header
LB: loop body
LE: loop exit
PB: predicated region body
PF: predicated region fallthrough
CT: control target
= control target key end

     0   :  { %11 = vsyncpa [#allocation6], 0  ;;  %s3418_s0 = inlined_call_operand.vmem [shape: f32[2,16,64], index: 0, kind: input, shape index: {}]   ;;  %s3419_s1 = inlined_call_operand.hbm [shape: bf16[7,64,256], index: 1, kind: input, shape index: {}]   ;;  %s3420_s2 = inlined_call_operand.vmem [shape: bf16[3,128,128], index: 2, kind: input, shape index: {}]   ;;  %s3421_s3 = inlined_call_operand.hbm [shape: bf16[7,128,128], index: 3, kind: input, shape index: {}]   ;;  %s3422_s4 = inlined_call_operand.vmem [shape: bf16[256,128], index: 4, kind: input, shape index: {}]   ;;  %s3423_s5 = inlined_call_operand.vmem [shape: f32[5,128], index: 5, kind: input, shape index: {}]   ;;  %s3424_s6 = inlined_call_operand.vmem [shape: f32[2,16,128], index: 6, kind: output, shape index: {}]  }
   0x1   :  { %s19_s23 = sshll.u32 %s3419_s1, 4  ;;  %s20_s23 = int_to_ptr.hbm [resolvable:$true] %s19_s23 }
   0x2   :  { %12 = vsyncpa [#allocation8], 0  ;;  %s3026_s24 = smov [#allocation5]   ;;  %s34_s28 = sshll.u32 %s3421_s3, 4  ;;  %s35_s28 = int_to_ptr.hbm [resolvable:$true] %s34_s28 }
   0x3   :  { %s21_s25 = sshll.u32 %s3026_s24, 4  ;;  %s3027_s29 = smov 128   ;;  %s22_s25 = int_to_ptr.vmem [resolvable:$true] %s21_s25 }
   0x4   :  { %s3028_s30 = smov 8   ;;  %s3029_s7 = smov [#allocation7]  }
   0x5   :  { %27 = dma.hbm_to_vmem [thread:$0]  %s20_s23, 7168, %s22_s25, [#allocation6], %s3027_s29, %s3027_s29, %s3028_s30  }
   0x6   :  { %s36_s8 = sshll.u32 %s3029_s7, 4  ;;  %s3030_s9 = smov 64   ;;  %s37_s8 = int_to_ptr.vmem [resolvable:$true] %s36_s8 }
   0x7   :  { %s3031_s10 = smov 4  }
   0x8   :  { %42 = dma.hbm_to_vmem [thread:$0]  %s35_s28, 7168, %s37_s8, [#allocation8], %s3030_s9, %s3030_s9, %s3031_s10  }
   0x9   :  { %3022 = dma.done.wait [#allocation6], 7168  }
   0xa   :  { %3023 = vsyncadd [#allocation6], 4294960128 }
   0xb   :  { %3024 = dma.done.wait [#allocation8], 7168  }
   0xc   :  { %3025 = vsyncadd [#allocation8], 4294960128  ;;  %vm56_vm0 = vcmask 523264   ;;  %v3032_v0 = vmov 0.0   ;;  %v2143_v1 = vld [vmem:[#allocation5 + $0x70] sm:$0xf] }
   0xd   :  { %60 = vst.msk [vmem:[#allocation2 + $0x18] sm:$0xff] %vm56_vm0, %v3032_v0  ;;  %v2816_v2 = vld [vmem:[#allocation5 + $0x74] sm:$0xf0]  ;;  %v2815_v3 = vld [vmem:[#allocation5 + $0x74] sm:$0xf]  ;;  %v67_v17 = vld [vmem:[%s3418_s0 + $0x8] sm:$0xff] }
   0xe   :  { %57 = vst.msk [vmem:[#allocation2] sm:$0xff] %vm56_vm0, %v3032_v0  ;;  %v2144_v4 = vor.u32 %v2816_v2, %v2143_v1  ;;  %v2145_v5 = vld [vmem:[#allocation5 + $0x78] sm:$0xf0]  ;;  %v2135_v6 = vld [vmem:[#allocation5 + $0x60] sm:$0xf]  ;;  %v2115_v18 = vld [vmem:[%s3418_s0 + $0x10] sm:$0xff] }
   0xf   :  { %58 = vst [vmem:[#allocation3] sm:$0xff] %v3032_v0  ;;  %v2814_v7 = vld [vmem:[#allocation5 + $0x64] sm:$0xf0]  ;;  %v2148_v8 = vor.u32 %v2815_v3, %v2145_v5  ;;  %v2813_v9 = vld [vmem:[#allocation5 + $0x64] sm:$0xf]  ;;  %v66_v24 = vld [vmem:[%s3418_s0] sm:$0xff] }
  0x10   :  { %59 = vst [vmem:[#allocation4] sm:$0xff] %v3032_v0  ;;  %v2137_v10 = vld [vmem:[#allocation5 + $0x68] sm:$0xf0]  ;;  %2953 = vmatpush.bf16.msra.mxu2 %v2144_v4  ;;  %v2136_v11 = vor.u32 %v2814_v7, %v2135_v6  ;;  %161 = vmatpush.bf16.msra.mxu0 %v2144_v4  ;;  %v2127_v13 = vld [vmem:[#allocation5 + $0x50] sm:$0xf] }
  0x11   :  { %61 = vst [vmem:[#allocation3 + $0x18] sm:$0xff] %v3032_v0  ;;  %2957 = vmatpush.bf16.msra.mxu3 %v2148_v8  ;;  %v2140_v12 = vor.u32 %v2813_v9, %v2137_v10  ;;  %v2812_v14 = vld [vmem:[#allocation5 + $0x54] sm:$0xf0]  ;;  %v2811_v15 = vld [vmem:[#allocation5 + $0x54] sm:$0xf]  ;;  %183 = vmatpush.bf16.msra.mxu1 %v2148_v8 }
  0x12   :  { %62 = vst [vmem:[#allocation4 + $0x18] sm:$0xff] %v3032_v0  ;;  %v2129_v16 = vld [vmem:[#allocation5 + $0x58] sm:$0xf0]  ;;  %v2119_v19 = vld [vmem:[#allocation5 + $0x40] sm:$0xf]  ;;  %v2128_v21 = vor.u32 %v2812_v14, %v2127_v13  ;;  %v2116_v28 = vld [vmem:[%s3418_s0 + $0x18] sm:$0xff] }
  0x13   :  { %63 = vst.msk [vmem:[#allocation2 + $0x30] sm:$0xff] %vm56_vm0, %v3032_v0  ;;  %v2810_v20 = vld [vmem:[#allocation5 + $0x44] sm:$0xf0]  ;;  %v2809_v22 = vld [vmem:[#allocation5 + $0x44] sm:$0xf]  ;;  %v2132_v25 = vor.u32 %v2811_v15, %v2129_v16 }
  0x14   :  { %69 = vst.msk [vmem:[#allocation2 + $0x10] sm:$0xff] %vm56_vm0, %v67_v17  ;;  %2954 = vmatpush.bf16.msra.mxu2 %v2136_v11  ;;  %v2121_v23 = vld [vmem:[#allocation5 + $0x48] sm:$0xf0]  ;;  %162 = vmatpush.bf16.msra.mxu0 %v2136_v11  ;;  %v2181_v26 = vld [vmem:[#allocation5 + $0x30] sm:$0xf]  ;;  %v2120_v33 = vor.u32 %v2810_v20, %v2119_v19 }
  0x15   :  { %73 = vst.msk [vmem:[#allocation2 + $0x20] sm:$0xff] %vm56_vm0, %v2115_v18  ;;  %2958 = vmatpush.bf16.msra.mxu3 %v2140_v12  ;;  %v2808_v27 = vld [vmem:[#allocation5 + $0x34] sm:$0xf0]  ;;  %184 = vmatpush.bf16.msra.mxu1 %v2140_v12  ;;  %v2807_v29 = vld [vmem:[#allocation5 + $0x34] sm:$0xf]  ;;  %v2124_v34 = vor.u32 %v2809_v22, %v2121_v23 }
  0x16   :  { %64 = vst [vmem:[#allocation3 + $0x30] sm:$0xff] %v3032_v0  ;;  %v2183_v30 = vld [vmem:[#allocation5 + $0x38] sm:$0xf0]  ;;  %v2219_v31 = vld [vmem:[#allocation5 + $0xb0] sm:$0xf]  ;;  %v2182_v35 = vor.u32 %v2808_v27, %v2181_v26 }
  0x17   :  { %65 = vst [vmem:[#allocation4 + $0x30] sm:$0xff] %v3032_v0  ;;  %v2824_v32 = vld [vmem:[#allocation5 + $0xb4] sm:$0xf0]  ;;  %v2173_v36 = vld [vmem:[#allocation5 + $0x20] sm:$0xf]  ;;  %v2186_v39 = vor.u32 %v2807_v29, %v2183_v30 }
  0x18   :  { %68 = vst.msk [vmem:[#allocation2 + $0x8] sm:$0xff] %vm56_vm0, %v66_v24  ;;  %2955 = vmatpush.bf16.msra.mxu2 %v2128_v21  ;;  %163 = vmatpush.bf16.msra.mxu0 %v2128_v21  ;;  %v2806_v37 = vld [vmem:[#allocation5 + $0x24] sm:$0xf0]  ;;  %v2220_v40 = vor.u32 %v2824_v32, %v2219_v31  ;;  %v2805_v41 = vld [vmem:[#allocation5 + $0x24] sm:$0xf] }
  0x19   :  { %74 = vst.msk [vmem:[#allocation2 + $0x28] sm:$0xff] %vm56_vm0, %v2116_v28  ;;  %2959 = vmatpush.bf16.msra.mxu3 %v2132_v25  ;;  %185 = vmatpush.bf16.msra.mxu1 %v2132_v25  ;;  %v2175_v42 = vld [vmem:[#allocation5 + $0x28] sm:$0xf0]  ;;  %v2211_v44 = vld [vmem:[#allocation5 + $0xa0] sm:$0xf]  ;;  %v2174_v50 = vor.u32 %v2806_v37, %v2173_v36 }
  0x1a   :  { %v2822_v45 = vld [vmem:[#allocation5 + $0xa4] sm:$0xf0]  ;;  %v2165_v47 = vld [vmem:[#allocation5 + $0x10] sm:$0xf]  ;;  %v2823_v48 = vld [vmem:[#allocation5 + $0xb4] sm:$0xf]  ;;  %v2178_v57 = vor.u32 %v2805_v41, %v2175_v42 }
  0x1b   :  { %v93_v38 = vld [vmem:[#allocation2 + $0x16] sm:$0xff]  ;;  %v2221_v49 = vld [vmem:[#allocation5 + $0xb8] sm:$0xf0]  ;;  %v2804_v51 = vld [vmem:[#allocation5 + $0x14] sm:$0xf0]  ;;  %v2212_v58 = vor.u32 %v2822_v45, %v2211_v44 }
  0x1c   :  { %v94_v43 = vld [vmem:[#allocation2 + $0x1e] sm:$0xff]  ;;  %2956 = vmatpush.bf16.msra.mxu2 %v2120_v33  ;;  %164 = vmatpush.bf16.msra.mxu0 %v2120_v33  ;;  %v2224_v54 = vor.u32 %v2823_v48, %v2221_v49  ;;  %v2203_v59 = vld [vmem:[#allocation5 + $0x90] sm:$0xf]  ;;  %v2821_v62 = vld [vmem:[#allocation5 + $0xa4] sm:$0xf]  ;;  %v2166_v2 = vor.u32 %v2804_v51, %v2165_v47 }
  0x1d   :  { %v97_v46 = vpack.c.bf16 %v94_v43, %v93_v38  ;;  %2960 = vmatpush.bf16.msra.mxu3 %v2124_v34  ;;  %v2803_v52 = vld [vmem:[#allocation5 + $0x14] sm:$0xf]  ;;  %v2167_v53 = vld [vmem:[#allocation5 + $0x18] sm:$0xf0]  ;;  %186 = vmatpush.bf16.msra.mxu1 %v2124_v34  ;;  %v2820_v61 = vld [vmem:[#allocation5 + $0x94] sm:$0xf0] }
  0x1e   :  { %v2213_v63 = vld [vmem:[#allocation5 + $0xa8] sm:$0xf0]  ;;  %v2157_v0 = vld [vmem:[#allocation5] sm:$0xf]  ;;  %v2802_v3 = vld [vmem:[#allocation5 + $0x4] sm:$0xf0]  ;;  %v2170_v6 = vor.u32 %v2803_v52, %v2167_v53  ;;  %v2204_v7 = vor.u32 %v2820_v61, %v2203_v59 }
  0x1f   :  { %v91_v55 = vld [vmem:[#allocation2 + $0x6] sm:$0xff]  ;;  %v92_v56 = vld [vmem:[#allocation2 + $0xe] sm:$0xff]  ;;  %2150 = vmatmul.msk.bf16.vlgmr.msra.gmra.mxu2 %vm56_vm0, %v97_v46  ;;  %v2216_v1 = vor.u32 %v2821_v62, %v2213_v63  ;;  %v2819_v9 = vld [vmem:[#allocation5 + $0x94] sm:$0xf]  ;;  %v2158_v18 = vor.u32 %v2802_v3, %v2157_v0 }
  0x20   :  { %254 = vmatpush.bf16.msrb.mxu2 %v2182_v35  ;;  %364 = vmatpush.bf16.msrb.mxu0 %v2220_v40  ;;  %v96_v60 = vpack.c.bf16 %v92_v56, %v91_v55  ;;  %v2801_v4 = vld [vmem:[#allocation5 + $0x4] sm:$0xf]  ;;  %v2159_v5 = vld [vmem:[#allocation5 + $0x8] sm:$0xf0]  ;;  %v2195_v8 = vld [vmem:[#allocation5 + $0x80] sm:$0xf] }
  0x21   :  { %276 = vmatpush.bf16.msrb.mxu3 %v2186_v39  ;;  %386 = vmatpush.bf16.msrb.mxu1 %v2224_v54  ;;  %v2205_v10 = vld [vmem:[#allocation5 + $0x98] sm:$0xf0]  ;;  %v2818_v11 = vld [vmem:[#allocation5 + $0x84] sm:$0xf0]  ;;  %v2257_v12 = vld [vmem:[#allocation5 + $0xf0] sm:$0xf]  ;;  %v2162_v20 = vor.u32 %v2801_v4, %v2159_v5 }
  0x22   :  { %2153 = vmatmul.msk.bf16.vlgmr.msra.gmra.mxu3 %vm56_vm0, %v97_v46  ;;  %2149 = vmatmul.msk.bf16.vlgmr.msra.gmra.mxu0 %vm56_vm0, %v96_v60  ;;  %v2832_v13 = vld [vmem:[#allocation5 + $0xf4] sm:$0xf0]  ;;  %v2208_v14 = vor.u32 %v2819_v9, %v2205_v10  ;;  %v2817_v15 = vld [vmem:[#allocation5 + $0x84] sm:$0xf]  ;;  %v2295_v16 = vld [vmem:[#allocation5 + $0x130] sm:$0xf]  ;;  %v2196_v21 = vor.u32 %v2818_v11, %v2195_v8 }
  0x23   :  { %2152 = vmatmul.msk.bf16.vlgmr.msra.gmra.mxu1 %vm56_vm0, %v96_v60  ;;  %v2840_v17 = vld [vmem:[#allocation5 + $0x134] sm:$0xf0]  ;;  %v2197_v19 = vld [vmem:[#allocation5 + $0x88] sm:$0xf0]  ;;  %v2258_v22 = vor.u32 %v2832_v13, %v2257_v12  ;;  %v95_v24 = vld [vmem:[#allocation2 + $0x26] sm:$0xff] }
  0x24   :  { %255 = vmatpush.bf16.msrb.mxu2 %v2174_v50  ;;  %365 = vmatpush.bf16.msrb.mxu0 %v2212_v58  ;;  %v2296_v23 = vor.u32 %v2840_v17, %v2295_v16  ;;  %v2200_v25 = vor.u32 %v2817_v15, %v2197_v19  ;;  %v2249_v26 = vld [vmem:[#allocation5 + $0xe0] sm:$0xf]  ;;  %v2830_v27 = vld [vmem:[#allocation5 + $0xe4] sm:$0xf0]  ;;  %v98_v30 = vpack.c.bf16 %v95_v24, %v95_v24  ;;  %v2241_v35 = vld [vmem:[#allocation5 + $0xd0] sm:$0xf] }
  0x25   :  { %277 = vmatpush.bf16.msrb.mxu3 %v2178_v57  ;;  %387 = vmatpush.bf16.msrb.mxu1 %v2216_v1  ;;  %v294_v28 = vld [vmem:[#allocation2 + $0x7] sm:$0xff]  ;;  %v295_v29 = vld [vmem:[#allocation2 + $0xf] sm:$0xff]  ;;  %v2250_v31 = vor.u32 %v2830_v27, %v2249_v26  ;;  %v2828_v37 = vld [vmem:[#allocation5 + $0xd4] sm:$0xf0] }
  0x26   :  { %v299_v32 = vpack.c.bf16 %v295_v29, %v294_v28  ;;  %v2287_v33 = vld [vmem:[#allocation5 + $0x120] sm:$0xf]  ;;  %v2838_v34 = vld [vmem:[#allocation5 + $0x124] sm:$0xf0]  ;;  %v2242_v38 = vor.u32 %v2828_v37, %v2241_v35  ;;  %v296_v41 = vld [vmem:[#allocation2 + $0x17] sm:$0xff] }
  0x27   :  { %v2288_v36 = vor.u32 %v2838_v34, %v2287_v33  ;;  %v75_v39 = vld [vmem:[#allocation2 + $0x5] sm:$0xff]  ;;  %v76_v40 = vld [vmem:[#allocation2 + $0xd] sm:$0xff]  ;;  %v2831_v45 = vld [vmem:[#allocation5 + $0xf4] sm:$0xf] }
  0x28   :  { %256 = vmatpush.bf16.msrb.mxu2 %v2166_v2  ;;  %366 = vmatpush.bf16.msrb.mxu0 %v2204_v7  ;;  %v297_v42 = vld [vmem:[#allocation2 + $0x1f] sm:$0xff]  ;;  %v80_v43 = vpack.c.bf16 %v76_v40, %v75_v39  ;;  %v2279_v48 = vld [vmem:[#allocation5 + $0x110] sm:$0xf]  ;;  %v2233_v50 = vld [vmem:[#allocation5 + $0xc0] sm:$0xf] }
  0x29   :  { %278 = vmatpush.bf16.msrb.mxu3 %v2170_v6  ;;  %388 = vmatpush.bf16.msrb.mxu1 %v2208_v14  ;;  %v300_v44 = vpack.c.bf16 %v297_v42, %v296_v41  ;;  %v2259_v46 = vld [vmem:[#allocation5 + $0xf8] sm:$0xf0]  ;;  %v2836_v49 = vld [vmem:[#allocation5 + $0x114] sm:$0xf0]  ;;  %v2826_v52 = vld [vmem:[#allocation5 + $0xc4] sm:$0xf0] }
  0x2a   :  { %v2262_v47 = vor.u32 %v2831_v45, %v2259_v46  ;;  %v2280_v51 = vor.u32 %v2836_v49, %v2279_v48  ;;  %v2829_v53 = vld [vmem:[#allocation5 + $0xe4] sm:$0xf]  ;;  %v2251_v54 = vld [vmem:[#allocation5 + $0xe8] sm:$0xf0]  ;;  %v2234_v55 = vor.u32 %v2826_v52, %v2233_v50  ;;  %v2827_v57 = vld [vmem:[#allocation5 + $0xd4] sm:$0xf] }
  0x2b   :  { %v2254_v56 = vor.u32 %v2829_v53, %v2251_v54  ;;  %v2243_v58 = vld [vmem:[#allocation5 + $0xd8] sm:$0xf0]  ;;  %v2839_v59 = vld [vmem:[#allocation5 + $0x134] sm:$0xf]  ;;  %v2271_v61 = vld [vmem:[#allocation5 + $0x100] sm:$0xf] }
  0x2c   :  { %257 = vmatpush.bf16.msrb.mxu2 %v2158_v18  ;;  %367 = vmatpush.bf16.msrb.mxu0 %v2196_v21  ;;  %v2297_v60 = vld [vmem:[#allocation5 + $0x138] sm:$0xf0]  ;;  %v2834_v62 = vld [vmem:[#allocation5 + $0x104] sm:$0xf0]  ;;  %v2837_v1 = vld [vmem:[#allocation5 + $0x124] sm:$0xf]  ;;  %v2246_v2 = vor.u32 %v2827_v57, %v2243_v58 }
  0x2d   :  { %279 = vmatpush.bf16.msrb.mxu3 %v2162_v20  ;;  %389 = vmatpush.bf16.msrb.mxu1 %v2200_v25  ;;  %v2300_v63 = vor.u32 %v2839_v59, %v2297_v60  ;;  %v2272_v0 = vor.u32 %v2834_v62, %v2271_v61  ;;  %v2289_v3 = vld [vmem:[#allocation5 + $0x128] sm:$0xf0]  ;;  %v2825_v4 = vld [vmem:[#allocation5 + $0xc4] sm:$0xf]  ;;  %v78_v8 = vld [vmem:[#allocation2 + $0x1d] sm:$0xff] }
  0x2e   :  { %v2235_v5 = vld [vmem:[#allocation5 + $0xc8] sm:$0xf0]  ;;  %v2292_v6 = vor.u32 %v2837_v1, %v2289_v3  ;;  %v298_v10 = vld [vmem:[#allocation2 + $0x27] sm:$0xff]  ;;  %v2835_v13 = vld [vmem:[#allocation5 + $0x114] sm:$0xf] }
  0x2f   :  { %2151 = vmatmul.msk.bf16.gmra.mxu2 %vm56_vm0, %v98_v30  ;;  %v77_v7 = vld [vmem:[#allocation2 + $0x15] sm:$0xff]  ;;  %v2238_v9 = vor.u32 %v2825_v4, %v2235_v5  ;;  %v301_v12 = vpack.c.bf16 %v298_v10, %v298_v10  ;;  %v2281_v14 = vld [vmem:[#allocation5 + $0x118] sm:$0xf0]  ;;  %v2848_v17 = vld [vmem:[#allocation5 + $0x174] sm:$0xf0] }
  0x30   :  { %482 = vmatpush.bf16.msra.mxu2 %v2258_v22  ;;  %600 = vmatpush.bf16.msra.mxu0 %v2296_v23  ;;  %v81_v11 = vpack.c.bf16 %v78_v8, %v77_v7  ;;  %v2284_v15 = vor.u32 %v2835_v13, %v2281_v14  ;;  %v2333_v16 = vld [vmem:[#allocation5 + $0x170] sm:$0xf]  ;;  %v2833_v18 = vld [vmem:[#allocation5 + $0x104] sm:$0xf]  ;;  %v2273_v20 = vld [vmem:[#allocation5 + $0x108] sm:$0xf0] }
  0x31   :  { %504 = vmatpush.bf16.msra.mxu3 %v2262_v47  ;;  %622 = vmatpush.bf16.msra.mxu1 %v2300_v63  ;;  %v2334_v19 = vor.u32 %v2848_v17, %v2333_v16  ;;  %v2371_v21 = vld [vmem:[#allocation5 + $0x1b0] sm:$0xf]  ;;  %v2856_v22 = vld [vmem:[#allocation5 + $0x1b4] sm:$0xf0]  ;;  %v2276_v23 = vor.u32 %v2833_v18, %v2273_v20  ;;  %v2325_v25 = vld [vmem:[#allocation5 + $0x160] sm:$0xf] }
  0x32   :  { %2154 = vmatmul.msk.bf16.gmra.mxu3 %vm56_vm0, %v98_v30  ;;  %2225 = vmatmul.msk.bf16.vlgmr.msrb.gmra.mxu0 %vm56_vm0, %v299_v32  ;;  %v2372_v24 = vor.u32 %v2856_v22, %v2371_v21  ;;  %v2846_v26 = vld [vmem:[#allocation5 + $0x164] sm:$0xf0]  ;;  %v79_v28 = vld [vmem:[#allocation2 + $0x25] sm:$0xff]  ;;  %v2317_v35 = vld [vmem:[#allocation5 + $0x150] sm:$0xf] }
  0x33   :  { %2228 = vmatmul.msk.bf16.vlgmr.msrb.gmra.mxu1 %vm56_vm0, %v299_v32  ;;  %v2326_v27 = vor.u32 %v2846_v26, %v2325_v25  ;;  %v530_v29 = vld [vmem:[#allocation2 + $0x9] sm:$0xff]  ;;  %v531_v30 = vld [vmem:[#allocation2 + $0x11] sm:$0xff]  ;;  %v2844_v37 = vld [vmem:[#allocation5 + $0x154] sm:$0xf0] }
  0x34   :  { %483 = vmatpush.bf16.msra.mxu2 %v2250_v31  ;;  %601 = vmatpush.bf16.msra.mxu0 %v2288_v36  ;;  %v82_v31 = vpack.c.bf16 %v79_v28, %v79_v28  ;;  %v535_v32 = vpack.c.bf16 %v531_v30, %v530_v29  ;;  %v2363_v33 = vld [vmem:[#allocation5 + $0x1a0] sm:$0xf]  ;;  %v2854_v34 = vld [vmem:[#allocation5 + $0x1a4] sm:$0xf0]  ;;  %v532_v41 = vld [vmem:[#allocation2 + $0x19] sm:$0xff] }
  0x35   :  { %505 = vmatpush.bf16.msra.mxu3 %v2254_v56  ;;  %623 = vmatpush.bf16.msra.mxu1 %v2292_v6  ;;  %v2364_v36 = vor.u32 %v2854_v34, %v2363_v33  ;;  %v412_v39 = vld [vmem:[#allocation2 + $0x8] sm:$0xff]  ;;  %v413_v40 = vld [vmem:[#allocation2 + $0x10] sm:$0xff]  ;;  %v2847_v45 = vld [vmem:[#allocation5 + $0x174] sm:$0xf] }
  0x36   :  { %v533_v42 = vld [vmem:[#allocation2 + $0x21] sm:$0xff]  ;;  %v2355_v48 = vld [vmem:[#allocation5 + $0x190] sm:$0xf]  ;;  %v2842_v52 = vld [vmem:[#allocation5 + $0x144] sm:$0xf0] }
  0x37   :  { %v2335_v46 = vld [vmem:[#allocation5 + $0x178] sm:$0xf0]  ;;  %v2852_v49 = vld [vmem:[#allocation5 + $0x194] sm:$0xf0]  ;;  %v2309_v50 = vld [vmem:[#allocation5 + $0x140] sm:$0xf] }
  0x38   :  { %484 = vmatpush.bf16.msra.mxu2 %v2242_v38  ;;  %602 = vmatpush.bf16.msra.mxu0 %v2280_v51  ;;  %v2318_v38 = vor.u32 %v2844_v37, %v2317_v35  ;;  %v2338_v47 = vor.u32 %v2847_v45, %v2335_v46  ;;  %v2356_v51 = vor.u32 %v2852_v49, %v2355_v48  ;;  %v2845_v53 = vld [vmem:[#allocation5 + $0x164] sm:$0xf]  ;;  %v2327_v54 = vld [vmem:[#allocation5 + $0x168] sm:$0xf0]  ;;  %v2843_v57 = vld [vmem:[#allocation5 + $0x154] sm:$0xf] }
  0x39   :  { %506 = vmatpush.bf16.msra.mxu3 %v2246_v2  ;;  %624 = vmatpush.bf16.msra.mxu1 %v2284_v15  ;;  %v2330_v56 = vor.u32 %v2845_v53, %v2327_v54  ;;  %v2319_v58 = vld [vmem:[#allocation5 + $0x158] sm:$0xf0]  ;;  %v2855_v59 = vld [vmem:[#allocation5 + $0x1b4] sm:$0xf]  ;;  %v2347_v61 = vld [vmem:[#allocation5 + $0x180] sm:$0xf] }
  0x3a   :  { %v2373_v60 = vld [vmem:[#allocation5 + $0x1b8] sm:$0xf0]  ;;  %v2850_v62 = vld [vmem:[#allocation5 + $0x184] sm:$0xf0]  ;;  %v2853_v1 = vld [vmem:[#allocation5 + $0x1a4] sm:$0xf]  ;;  %v2322_v2 = vor.u32 %v2843_v57, %v2319_v58 }
  0x3b   :  { %v2376_v63 = vor.u32 %v2855_v59, %v2373_v60  ;;  %v2365_v3 = vld [vmem:[#allocation5 + $0x1a8] sm:$0xf0]  ;;  %v2841_v4 = vld [vmem:[#allocation5 + $0x144] sm:$0xf]  ;;  %v414_v7 = vld [vmem:[#allocation2 + $0x18] sm:$0xff] }
  0x3c   :  { %485 = vmatpush.bf16.msra.mxu2 %v2234_v55  ;;  %603 = vmatpush.bf16.msra.mxu0 %v2272_v0  ;;  %v2310_v55 = vor.u32 %v2842_v52, %v2309_v50  ;;  %v2348_v0 = vor.u32 %v2850_v62, %v2347_v61  ;;  %v2311_v5 = vld [vmem:[#allocation5 + $0x148] sm:$0xf0]  ;;  %v2368_v6 = vor.u32 %v2853_v1, %v2365_v3  ;;  %v415_v8 = vld [vmem:[#allocation2 + $0x20] sm:$0xff]  ;;  %v534_v10 = vld [vmem:[#allocation2 + $0x29] sm:$0xff] }
  0x3d   :  { %507 = vmatpush.bf16.msra.mxu3 %v2238_v9  ;;  %625 = vmatpush.bf16.msra.mxu1 %v2276_v23  ;;  %v2314_v9 = vor.u32 %v2841_v4, %v2311_v5  ;;  %v2851_v13 = vld [vmem:[#allocation5 + $0x194] sm:$0xf]  ;;  %v2357_v14 = vld [vmem:[#allocation5 + $0x198] sm:$0xf0]  ;;  %v2849_v16 = vld [vmem:[#allocation5 + $0x184] sm:$0xf] }
  0x3e   :  { %v2360_v15 = vor.u32 %v2851_v13, %v2357_v14  ;;  %v2349_v17 = vld [vmem:[#allocation5 + $0x188] sm:$0xf0]  ;;  %v766_v20 = vld [vmem:[#allocation2 + $0xb] sm:$0xff]  ;;  %v768_v26 = vld [vmem:[#allocation2 + $0x1b] sm:$0xff] }
  0x3f   :  { %2187 = vmatmul.msk.bf16.vlgmr.msrb.gmra.mxu2 %vm56_vm0, %v80_v43  ;;  %v2352_v18 = vor.u32 %v2849_v16, %v2349_v17  ;;  %v767_v21 = vld [vmem:[#allocation2 + $0x13] sm:$0xff]  ;;  %v652_v48 = vld [vmem:[#allocation2 + $0x2a] sm:$0xff] }
  0x40   :  { %718 = vmatpush.bf16.msrb.mxu2 %v2334_v19  ;;  %836 = vmatpush.bf16.msrb.mxu0 %v2372_v24  ;;  %v416_v19 = vld [vmem:[#allocation2 + $0x28] sm:$0xff]  ;;  %v771_v23 = vpack.c.bf16 %v767_v21, %v766_v20  ;;  %v649_v25 = vld [vmem:[#allocation2 + $0x12] sm:$0xff]  ;;  %v650_v35 = vld [vmem:[#allocation2 + $0x1a] sm:$0xff]  ;;  %v655_v52 = vpack.c.bf16 %v652_v48, %v652_v48 }
  0x41   :  { %858 = vmatpush.bf16.msrb.mxu1 %v2376_v63  ;;  %v419_v22 = vpack.c.bf16 %v416_v19, %v416_v19  ;;  %v648_v24 = vld [vmem:[#allocation2 + $0xa] sm:$0xff] }
  0x42   :  { %2190 = vmatmul.msk.bf16.vlgmr.msrb.gmra.mxu3 %vm56_vm0, %v80_v43  ;;  %2226 = vmatmul.msk.bf16.gmra.mxu0 %vm56_vm0, %v300_v44  ;;  %v417_v43 = vpack.c.bf16 %v413_v40, %v412_v39  ;;  %v653_v28 = vpack.c.bf16 %v649_v25, %v648_v24  ;;  %v770_v39 = vld [vmem:[#allocation2 + $0x2b] sm:$0xff] }
  0x43   :  { %2229 = vmatmul.msk.bf16.gmra.mxu1 %vm56_vm0, %v300_v44  ;;  %v536_v44 = vpack.c.bf16 %v533_v42, %v532_v41  ;;  %740 = vmatpush.bf16.msrb.mxu3 %v2338_v47  ;;  %v773_v42 = vpack.c.bf16 %v770_v39, %v770_v39 }
  0x44   :  { %719 = vmatpush.bf16.msrb.mxu2 %v2326_v27  ;;  %837 = vmatpush.bf16.msrb.mxu0 %v2364_v36  ;;  %v769_v27 = vld [vmem:[#allocation2 + $0x23] sm:$0xff] }
  0x45   :  { %859 = vmatpush.bf16.msrb.mxu1 %v2368_v6  ;;  %v772_v29 = vpack.c.bf16 %v769_v27, %v768_v26  ;;  %v651_v36 = vld [vmem:[#allocation2 + $0x22] sm:$0xff] }
  0x46   :  { %v654_v41 = vpack.c.bf16 %v651_v36, %v650_v35  ;;  %v2870_v35 = vld [vmem:[%s3420_s2 + $0x68] sm:$0xff] }
  0x47   :  { %741 = vmatpush.bf16.msrb.mxu3 %v2330_v56 }
  0x48   :  { %720 = vmatpush.bf16.msrb.mxu2 %v2318_v38  ;;  %838 = vmatpush.bf16.msrb.mxu0 %v2356_v51 }
  0x49   :  { %860 = vmatpush.bf16.msrb.mxu1 %v2360_v15 }
  0x4b   :  { %742 = vmatpush.bf16.msrb.mxu3 %v2322_v2 }
  0x4c   :  { %721 = vmatpush.bf16.msrb.mxu2 %v2310_v55  ;;  %839 = vmatpush.bf16.msrb.mxu0 %v2348_v0 }
  0x4d   :  { %861 = vmatpush.bf16.msrb.mxu1 %v2352_v18 }
  0x4f   :  { %2188 = vmatmul.msk.bf16.gmra.mxu2 %vm56_vm0, %v81_v11  ;;  %743 = vmatpush.bf16.msrb.mxu3 %v2314_v9 }
  0x52   :  { %2191 = vmatmul.msk.bf16.gmra.mxu3 %vm56_vm0, %v81_v11  ;;  %2227 = vmatmul.msk.bf16.gmra.mxu0 %vm56_vm0, %v301_v12  ;;  %v418_v11 = vpack.c.bf16 %v415_v8, %v414_v7 }
  0x53   :  { %2230 = vmatmul.msk.bf16.gmra.mxu1 %vm56_vm0, %v301_v12  ;;  %v537_v12 = vpack.c.bf16 %v534_v10, %v534_v10 }
  0x5f   :  { %2189 = vmatmul.msk.bf16.gmra.mxu2 %vm56_vm0, %v82_v31 }
  0x62   :  { %2192 = vmatmul.msk.bf16.gmra.mxu3 %vm56_vm0, %v82_v31  ;;  %2301 = vmatmul.msk.bf16.vlgmr.msra.gmra.mxu0 %vm56_vm0, %v535_v32 }
  0x63   :  { %2304 = vmatmul.msk.bf16.vlgmr.msra.gmra.mxu1 %vm56_vm0, %v535_v32 }
  0x6f   :  { %2263 = vmatmul.msk.bf16.vlgmr.msra.gmra.mxu2 %vm56_vm0, %v417_v43 }
  0x72   :  { %2266 = vmatmul.msk.bf16.vlgmr.msra.gmra.mxu3 %vm56_vm0, %v417_v43  ;;  %2302 = vmatmul.msk.bf16.gmra.mxu0 %vm56_vm0, %v536_v44 }
  0x73   :  { %2305 = vmatmul.msk.bf16.gmra.mxu1 %vm56_vm0, %v536_v44 }
  0x7f   :  { %2264 = vmatmul.msk.bf16.gmra.mxu2 %vm56_vm0, %v418_v11 }
  0x82   :  { %2267 = vmatmul.msk.bf16.gmra.mxu3 %vm56_vm0, %v418_v11  ;;  %2303 = vmatmul.msk.bf16.gmra.mxu0 %vm56_vm0, %v537_v12 }
  0x83   :  { %2306 = vmatmul.msk.bf16.gmra.mxu1 %vm56_vm0, %v537_v12 }
  0x8f   :  { %2265 = vmatmul.msk.bf16.gmra.mxu2 %vm56_vm0, %v419_v22 }
  0x92   :  { %2268 = vmatmul.msk.bf16.gmra.mxu3 %vm56_vm0, %v419_v22  ;;  %2377 = vmatmul.msk.bf16.vlgmr.msrb.gmra.mxu0 %vm56_vm0, %v771_v23  ;;  %v2872_v22 = vld [vmem:[%s3420_s2 + $0x78] sm:$0xff] }
  0x93   :  { %2380 = vmatmul.msk.bf16.vlgmr.msrb.gmra.mxu1 %vm56_vm0, %v771_v23  ;;  %v2864_v23 = vld [vmem:[%s3420_s2 + $0x38] sm:$0xff]  ;;  %1010 = vmatpush.bf16.msra.mxu2 %v2872_v22 }
  0x94   :  { %1081 = vmatpush.bf16.msra.mxu3 %v2864_v23 }
  0x9f   :  { %v166_v30 = vpop.f32.mrf.mxu0  ;;  %2339 = vmatmul.msk.bf16.vlgmr.msrb.gmra.mxu2 %vm56_vm0, %v653_v28 }
  0xa0   :  { %v188_v31 = vpop.f32.mrf.mxu1 }
  0xa2   :  { %2342 = vmatmul.msk.bf16.vlgmr.msrb.gmra.mxu3 %vm56_vm0, %v653_v28  ;;  %2378 = vmatmul.msk.bf16.gmra.mxu0 %vm56_vm0, %v772_v29  ;;  %v171_v32 = vpop.f32.mrf.mxu2 }
  0xa3   :  { %2381 = vmatmul.msk.bf16.gmra.mxu1 %vm56_vm0, %v772_v29  ;;  %v2871_v29 = vld [vmem:[%s3420_s2 + $0x70] sm:$0xff] }
  0xa4   :  { %1011 = vmatpush.bf16.msra.mxu2 %v2871_v29 }
  0xa5   :  { %v193_v33 = vpop.f32.mrf.mxu3 }
  0xa6   :  { %v2863_v33 = vld [vmem:[%s3420_s2 + $0x30] sm:$0xff] }
  0xa7   :  { %v3129_v34 = vpop.f32.mrf.mxu0  ;;  %1082 = vmatpush.bf16.msra.mxu3 %v2863_v33 }
  0xa8   :  { %v3131_v37 = vpop.f32.mrf.mxu1  ;;  %1012 = vmatpush.bf16.msra.mxu2 %v2870_v35  ;;  %v2873_v35 = vld [vmem:[%s3420_s2 + $0x80] sm:$0xff] }
  0xaa   :  { %v3133_v38 = vpop.f32.mrf.mxu2 }
  0xad   :  { %v3135_v40 = vpop.f32.mrf.mxu3 }
  0xaf   :  { %v369_v43 = vpop.f32.mrf.mxu0  ;;  %2340 = vmatmul.msk.bf16.gmra.mxu2 %vm56_vm0, %v654_v41 }
  0xb0   :  { %v391_v44 = vpop.f32.mrf.mxu1 }
  0xb2   :  { %2343 = vmatmul.msk.bf16.gmra.mxu3 %vm56_vm0, %v654_v41  ;;  %2379 = vmatmul.msk.bf16.gmra.mxu0 %vm56_vm0, %v773_v42  ;;  %v175_v45 = vpop.f32.mrf.mxu2 }
  0xb3   :  { %2382 = vmatmul.msk.bf16.gmra.mxu1 %vm56_vm0, %v773_v42  ;;  %v2862_v42 = vld [vmem:[%s3420_s2 + $0x28] sm:$0xff] }
  0xb4   :  { %1083 = vmatpush.bf16.msra.mxu3 %v2862_v42  ;;  %v2889_v42 = vld [vmem:[#allocation7 + $0x40] sm:$0xff] }
  0xb5   :  { %v197_v46 = vpop.f32.mrf.mxu3 }
  0xb7   :  { %v3141_v47 = vpop.f32.mrf.mxu0 }
  0xb8   :  { %v3143_v49 = vpop.f32.mrf.mxu1 }
  0xba   :  { %v177_v50 = vpop.f32.mrf.mxu2 }
  0xbd   :  { %v199_v51 = vpop.f32.mrf.mxu3 }
  0xbe   :  { %v2879_v51 = vld [vmem:[%s3420_s2 + $0xb0] sm:$0xff] }
  0xbf   :  { %v374_v53 = vpop.f32.mrf.mxu0  ;;  %2341 = vmatmul.msk.bf16.gmra.mxu2 %vm56_vm0, %v655_v52 }
  0xc0   :  { %v396_v54 = vpop.f32.mrf.mxu1 }
  0xc2   :  { %2344 = vmatmul.msk.bf16.gmra.mxu3 %vm56_vm0, %v655_v52  ;;  %v259_v55 = vpop.f32.mrf.mxu2  ;;  %v2895_v52 = vld [vmem:[#allocation7 + $0x70] sm:$0xff] }
  0xc3   :  { %v260_v56 = vadd.f32 %v259_v55, %v166_v30  ;;  %v2868_v55 = vld [vmem:[%s3420_s2 + $0x58] sm:$0xff] }
  0xc5   :  { %v281_v57 = vpop.f32.mrf.mxu3  ;;  %v404_v59 = vadd.f32 %v369_v43, %v260_v56  ;;  %v2880_v43 = vld [vmem:[%s3420_s2 + $0xb8] sm:$0xff]  ;;  %v2878_v56 = vld [vmem:[%s3420_s2 + $0xa8] sm:$0xff] }
  0xc6   :  { %v282_v58 = vadd.f32 %v281_v57, %v188_v31  ;;  %1177 = vmatpush.bf16.msra.mxu0 %v2880_v43 }
  0xc7   :  { %v3147_v61 = vpop.f32.mrf.mxu0 }
  0xc8   :  { %v405_v60 = vadd.f32 %v391_v44, %v282_v58  ;;  %v3149_v62 = vpop.f32.mrf.mxu1  ;;  %v2896_v44 = vld [vmem:[#allocation7 + $0x78] sm:$0xff]  ;;  %v2894_v58 = vld [vmem:[#allocation7 + $0x68] sm:$0xff] }
  0xc9   :  { %1314 = vmatpush.bf16.msra.mxu1 %v2896_v44 }
  0xca   :  { %v3151_v63 = vpop.f32.mrf.mxu2  ;;  %1178 = vmatpush.bf16.msra.mxu0 %v2879_v51 }
  0xcd   :  { %v3153_v0 = vpop.f32.mrf.mxu3  ;;  %1315 = vmatpush.bf16.msra.mxu1 %v2895_v52 }
  0xce   :  { %1179 = vmatpush.bf16.msra.mxu0 %v2878_v56 }
  0xcf   :  { %v378_v1 = vpop.f32.mrf.mxu0 }
  0xd0   :  { %v400_v2 = vpop.f32.mrf.mxu1 }
  0xd1   :  { %1316 = vmatpush.bf16.msra.mxu1 %v2894_v58 }
  0xd2   :  { %v264_v3 = vpop.f32.mrf.mxu2 }
  0xd5   :  { %v286_v4 = vpop.f32.mrf.mxu3 }
  0xd7   :  { %v380_v5 = vpop.f32.mrf.mxu0 }
  0xd8   :  { %v402_v6 = vpop.f32.mrf.mxu1  ;;  %v2860_v5 = vld [vmem:[%s3420_s2 + $0x18] sm:$0xff] }
  0xd9   :  { %v2876_v6 = vld [vmem:[%s3420_s2 + $0x98] sm:$0xff] }
  0xda   :  { %v3155_v7 = vpop.f32.mrf.mxu2 }
  0xdd   :  { %v3157_v8 = vpop.f32.mrf.mxu3 }
  0xdf   :  { %v605_v9 = vpop.f32.mrf.mxu0 }
  0xe0   :  { %v627_v10 = vpop.f32.mrf.mxu1 }
  0xe2   :  { %v268_v11 = vpop.f32.mrf.mxu2 }
  0xe3   :  { %v269_v12 = vadd.f32 %v268_v11, %v175_v45  ;;  %v2869_v45 = vld [vmem:[%s3420_s2 + $0x60] sm:$0xff] }
  0xe4   :  { %1013 = vmatpush.bf16.msra.mxu2 %v2869_v45 }
  0xe5   :  { %v290_v13 = vpop.f32.mrf.mxu3  ;;  %v3159_v15 = vadd.f32 %v378_v1, %v269_v12  ;;  %v2893_v1 = vld [vmem:[#allocation7 + $0x60] sm:$0xff] }
  0xe6   :  { %v291_v14 = vadd.f32 %v290_v13, %v197_v46  ;;  %v2861_v46 = vld [vmem:[%s3420_s2 + $0x20] sm:$0xff]  ;;  %1317 = vmatpush.bf16.msra.mxu1 %v2893_v1  ;;  %v2859_v13 = vld [vmem:[%s3420_s2 + $0x10] sm:$0xff] }
  0xe7   :  { %v3163_v17 = vpop.f32.mrf.mxu0  ;;  %1084 = vmatpush.bf16.msra.mxu3 %v2861_v46  ;;  %v262_v46 = vadd.f32 %v3151_v63, %v3129_v34  ;;  %v3277_v34 = vld [vmem:[%s3423_s5 + $0x2] ss:$0 sm:$0xff] }
  0xe8   :  { %v3161_v16 = vadd.f32 %v400_v2, %v291_v14  ;;  %v3165_v18 = vpop.f32.mrf.mxu1  ;;  %1014 = vmatpush.bf16.msra.mxu2 %v2868_v55  ;;  %v2867_v2 = vld [vmem:[%s3420_s2 + $0x50] sm:$0xff]  ;;  %v2904_v63 = vld [vmem:[#allocation7 + $0xb8] sm:$0xff] }
  0xe9   :  { %v2875_v14 = vld [vmem:[%s3420_s2 + $0x90] sm:$0xff]  ;;  %v406_v52 = vadd.f32 %v3141_v47, %v262_v46 }
  0xea   :  { %v270_v19 = vpop.f32.mrf.mxu2  ;;  %v2918_v46 = vld [vmem:[#allocation7 + $0x128] sm:$0xff] }
  0xeb   :  { %1085 = vmatpush.bf16.msra.mxu3 %v2860_v5  ;;  %v2891_v19 = vld [vmem:[#allocation7 + $0x50] sm:$0xff] }
  0xec   :  { %1015 = vmatpush.bf16.msra.mxu2 %v2867_v2 }
  0xed   :  { %v292_v20 = vpop.f32.mrf.mxu3 }
  0xef   :  { %v610_v21 = vpop.f32.mrf.mxu0  ;;  %1086 = vmatpush.bf16.msra.mxu3 %v2859_v13  ;;  %v2886_v13 = vld [vmem:[#allocation7 + $0x28] sm:$0xff] }
  0xf0   :  { %v632_v24 = vpop.f32.mrf.mxu1  ;;  %v2865_v21 = vld [vmem:[%s3420_s2 + $0x40] sm:$0xff] }
  0xf2   :  { %v487_v25 = vpop.f32.mrf.mxu2 }
  0xf3   :  { %v522_v26 = vadd.f32 %v487_v25, %v404_v59  ;;  %v2858_v25 = vld [vmem:[%s3420_s2 + $0x8] sm:$0xff] }
  0xf4   :  { %1087 = vmatpush.bf16.msra.mxu3 %v2858_v25  ;;  %v288_v25 = vadd.f32 %v3157_v8, %v3135_v40 }
  0xf5   :  { %v509_v27 = vpop.f32.mrf.mxu3  ;;  %v3176_v30 = vadd.f32 %v605_v9, %v522_v26  ;;  %v2892_v9 = vld [vmem:[#allocation7 + $0x58] sm:$0xff]  ;;  %v2874_v26 = vld [vmem:[%s3420_s2 + $0x88] sm:$0xff] }
  0xf6   :  { %v523_v28 = vadd.f32 %v509_v27, %v405_v60  ;;  %v2877_v60 = vld [vmem:[%s3420_s2 + $0xa0] sm:$0xff]  ;;  %1318 = vmatpush.bf16.msra.mxu1 %v2892_v9  ;;  %v2890_v27 = vld [vmem:[#allocation7 + $0x48] sm:$0xff] }
  0xf7   :  { %v3180_v32 = vpop.f32.mrf.mxu0  ;;  %1180 = vmatpush.bf16.msra.mxu0 %v2877_v60 }
  0xf8   :  { %v3178_v31 = vadd.f32 %v627_v10, %v523_v28  ;;  %v3188_v36 = vpop.f32.mrf.mxu1  ;;  %v2866_v10 = vld [vmem:[%s3420_s2 + $0x48] sm:$0xff] }
  0xf9   :  { %1016 = vmatpush.bf16.msra.mxu2 %v2866_v10 }
  0xfa   :  { %v3190_v39 = vpop.f32.mrf.mxu2  ;;  %1319 = vmatpush.bf16.msra.mxu1 %v2891_v19  ;;  %v2920_v19 = vld [vmem:[#allocation7 + $0x138] sm:$0xff] }
  0xfb   :  { %1181 = vmatpush.bf16.msra.mxu0 %v2876_v6  ;;  %v524_v47 = vadd.f32 %v3190_v39, %v406_v52  ;;  %v2883_v52 = vld [vmem:[#allocation7 + $0x10] sm:$0xff] }
  0xfd   :  { %v3192_v41 = vpop.f32.mrf.mxu3  ;;  %1017 = vmatpush.bf16.msra.mxu2 %v2865_v21  ;;  %v642_v5 = vadd.f32 %v3163_v17, %v524_v47  ;;  %v2902_v17 = vld [vmem:[#allocation7 + $0xa8] sm:$0xff] }
  0xfe   :  { %1320 = vmatpush.bf16.msra.mxu1 %v2890_v27 }
  0xff   :  { %v614_v48 = vpop.f32.mrf.mxu0  ;;  %1182 = vmatpush.bf16.msra.mxu0 %v2875_v14 }
 0x100   :  { %v636_v50 = vpop.f32.mrf.mxu1 }
 0x102   :  { %v492_v53 = vpop.f32.mrf.mxu2  ;;  %1321 = vmatpush.bf16.msra.mxu1 %v2889_v42 }
 0x103   :  { %1183 = vmatpush.bf16.msra.mxu0 %v2874_v26 }
 0x105   :  { %v514_v54 = vpop.f32.mrf.mxu3 }
 0x106   :  { %v3270_v54 = vld [vmem:[%s3423_s5] ss:$0 sm:$0xff]  ;;  %1683 = vmatpush.bf16.msrb.mxu1 %v2920_v19 }
 0x107   :  { %v616_v57 = vpop.f32.mrf.mxu0  ;;  %1184 = vmatpush.bf16.msra.mxu0 %v2873_v35  ;;  %v2901_v35 = vld [vmem:[#allocation7 + $0xa0] sm:$0xff] }
 0x108   :  { %v638_v59 = vpop.f32.mrf.mxu1 }
 0x10a   :  { %v3221_v3 = vpop.f32.mrf.mxu2 }
 0x10d   :  { %v3223_v4 = vpop.f32.mrf.mxu3 }
 0x10f   :  { %v841_v11 = vpop.f32.mrf.mxu0 }
 0x110   :  { %v863_v12 = vpop.f32.mrf.mxu1 }
 0x112   :  { %v496_v20 = vpop.f32.mrf.mxu2 }
 0x113   :  { %v528_v22 = vadd.f32 %v496_v20, %v3159_v15 }
 0x115   :  { %v518_v23 = vpop.f32.mrf.mxu3  ;;  %v3251_v28 = vadd.f32 %v614_v48, %v528_v22  ;;  %v284_v48 = vadd.f32 %v3153_v0, %v3131_v37  ;;  %v2888_v37 = vld [vmem:[#allocation7 + $0x38] sm:$0xff]  ;;  %v2885_v22 = vld [vmem:[#allocation7 + $0x20] sm:$0xff] }
 0x116   :  { %v529_v24 = vadd.f32 %v518_v23, %v3161_v16  ;;  %v2857_v16 = vld [vmem:[%s3420_s2] sm:$0xff]  ;;  %1385 = vmatpush.bf16.msrb.mxu2 %v2888_v37 }
 0x117   :  { %v843_v15 = vpop.f32.mrf.mxu0  ;;  %1088 = vmatpush.bf16.msra.mxu3 %v2857_v16  ;;  %v407_v56 = vadd.f32 %v3143_v49, %v284_v48  ;;  %v2887_v49 = vld [vmem:[#allocation7 + $0x30] sm:$0xff] }
 0x118   :  { %v3253_v29 = vadd.f32 %v636_v50, %v529_v24  ;;  %v865_v33 = vpop.f32.mrf.mxu1  ;;  %v2919_v24 = vld [vmem:[#allocation7 + $0x130] sm:$0xff] }
 0x119   :  { %1684 = vmatpush.bf16.msrb.mxu1 %v2919_v24 }
 0x11a   :  { %v498_v43 = vpop.f32.mrf.mxu2  ;;  %1386 = vmatpush.bf16.msrb.mxu2 %v2887_v49 }
 0x11b   :  { %1481 = vmatpush.bf16.msrb.mxu3 %v2904_v63  ;;  %v409_v43 = vadd.f32 %v3149_v62, %v288_v25  ;;  %v2917_v62 = vld [vmem:[#allocation7 + $0x120] sm:$0xff]  ;;  %v2908_v25 = vld [vmem:[#allocation7 + $0xd8] sm:$0xff] }
 0x11d   :  { %v520_v44 = vpop.f32.mrf.mxu3  ;;  %v527_v48 = vadd.f32 %v3223_v4, %v409_v43  ;;  %1685 = vmatpush.bf16.msrb.mxu1 %v2918_v46  ;;  %v2906_v46 = vld [vmem:[#allocation7 + $0xc8] sm:$0xff] }
 0x11e   :  { %1387 = vmatpush.bf16.msrb.mxu2 %v2886_v13  ;;  %v2884_v44 = vld [vmem:[#allocation7 + $0x18] sm:$0xff] }
 0x11f   :  { %v846_v45 = vpop.f32.mrf.mxu0 }
 0x120   :  { %v868_v50 = vpop.f32.mrf.mxu1  ;;  %v2912_v45 = vld [vmem:[#allocation7 + $0xf8] sm:$0xff] }
 0x121   :  { %1582 = vmatpush.bf16.msrb.mxu0 %v2912_v45  ;;  %1686 = vmatpush.bf16.msrb.mxu1 %v2917_v62 }
 0x122   :  { %v723_v51 = vpop.f32.mrf.mxu2  ;;  %1388 = vmatpush.bf16.msrb.mxu2 %v2885_v22  ;;  %v3315_v22 = vld [vmem:[#allocation3] sm:$0xff] }
 0x123   :  { %v758_v53 = vadd.f32 %v723_v51, %v3176_v30  ;;  %v525_v30 = vadd.f32 %v3192_v41, %v407_v56  ;;  %v2911_v51 = vld [vmem:[#allocation7 + $0xf0] sm:$0xff] }
 0x125   :  { %v745_v55 = vpop.f32.mrf.mxu3  ;;  %v876_v0 = vadd.f32 %v841_v11, %v758_v53  ;;  %v643_v39 = vadd.f32 %v3165_v18, %v525_v30  ;;  %v266_v18 = vadd.f32 %v3155_v7, %v3133_v38  ;;  %1583 = vmatpush.bf16.msrb.mxu0 %v2911_v51 }
 0x126   :  { %v759_v57 = vadd.f32 %v745_v55, %v3178_v31  ;;  %1389 = vmatpush.bf16.msrb.mxu2 %v2884_v44 }
 0x127   :  { %v3281_v59 = vpop.f32.mrf.mxu0  ;;  %v886_v31 = vadd.f32 %v3270_v54, %v876_v0  ;;  %v408_v42 = vadd.f32 %v3147_v61, %v266_v18  ;;  %v2900_v61 = vld [vmem:[#allocation7 + $0x98] sm:$0xff] }
 0x128   :  { %v877_v58 = vadd.f32 %v863_v12, %v759_v57  ;;  %v3285_v1 = vpop.f32.mrf.mxu1  ;;  %v2903_v12 = vld [vmem:[#allocation7 + $0xb0] sm:$0xff] }
 0x129   :  { %v890_v2 = vmax.f32 %v886_v31, 0.0  ;;  %1482 = vmatpush.bf16.msrb.mxu3 %v2903_v12  ;;  %v526_v8 = vadd.f32 %v3221_v3, %v408_v42  ;;  %v645_v3 = vadd.f32 %v3188_v36, %v527_v48  ;;  %v2910_v36 = vld [vmem:[#allocation7 + $0xe8] sm:$0xff]  ;;  %v2913_v42 = vld [vmem:[#allocation7 + $0x100] sm:$0xff]  ;;  %v2936_v48 = vld [vmem:[#allocation7 + $0x1b8] sm:$0xff] }
 0x12a   :  { %v896_v60 = vadd.f32 %v3277_v34, %v877_v58  ;;  %v725_v9 = vpop.f32.mrf.mxu2  ;;  %1390 = vmatpush.bf16.msrb.mxu2 %v2883_v52  ;;  %1584 = vmatpush.bf16.msrb.mxu0 %v2910_v36  ;;  %v2898_v12 = vld [vmem:[#allocation7 + $0x88] sm:$0xff]  ;;  %v2923_v36 = vld [vmem:[#allocation7 + $0x150] sm:$0xff] }
 0x12b   :  { %904 = vst [vmem:[#allocation3 + $0x8] sm:$0xff] %v890_v2  ;;  %v760_v41 = vadd.f32 %v725_v9, %v642_v5  ;;  %v644_v55 = vadd.f32 %v3180_v32, %v526_v8  ;;  %v2916_v5 = vld [vmem:[#allocation7 + $0x118] sm:$0xff]  ;;  %v2899_v9 = vld [vmem:[#allocation7 + $0x90] sm:$0xff] }
 0x12c   :  { %v900_v6 = vmax.f32 %v896_v60, 0.0  ;;  %1687 = vmatpush.bf16.msrb.mxu1 %v2916_v5 }
 0x12d   :  { %v747_v10 = vpop.f32.mrf.mxu3  ;;  %v878_v14 = vadd.f32 %v843_v15, %v760_v41  ;;  %1483 = vmatpush.bf16.msrb.mxu3 %v2902_v17 }
 0x12e   :  { %906 = vst [vmem:[#allocation4 + $0x8] sm:$0xff] %v900_v6  ;;  %v761_v11 = vadd.f32 %v747_v10, %v643_v39  ;;  %v2882_v39 = vld [vmem:[#allocation7 + $0x8] sm:$0xff]  ;;  %v2909_v10 = vld [vmem:[#allocation7 + $0xe0] sm:$0xff] }
 0x12f   :  { %v3289_v21 = vpop.f32.mrf.mxu0  ;;  %v887_v23 = vadd.f32 %v3270_v54, %v878_v14  ;;  %1391 = vmatpush.bf16.msrb.mxu2 %v2882_v39  ;;  %v2881_v14 = vld [vmem:[#allocation7] sm:$0xff]  ;;  %1585 = vmatpush.bf16.msrb.mxu0 %v2909_v10 }
 0x130   :  { %v879_v20 = vadd.f32 %v865_v33, %v761_v11  ;;  %v3297_v27 = vpop.f32.mrf.mxu1 }
 0x131   :  { %v891_v15 = vmax.f32 %v887_v23, 0.0  ;;  %1484 = vmatpush.bf16.msrb.mxu3 %v2901_v35 }
 0x132   :  { %v897_v26 = vadd.f32 %v3277_v34, %v879_v20  ;;  %v728_v33 = vpop.f32.mrf.mxu2  ;;  %v913_v56 = vld [vmem:[#allocation3 + $0x7] sm:$0xff] }
 0x133   :  { %905 = vst [vmem:[#allocation3 + $0x10] sm:$0xff] %v891_v15  ;;  %v942_v7 = vpack.c.bf16 %v891_v15, %v890_v2  ;;  %1392 = vmatpush.bf16.msrb.mxu2 %v2881_v14  ;;  %1586 = vmatpush.bf16.msrb.mxu0 %v2908_v25  ;;  %v2907_v33 = vld [vmem:[#allocation7 + $0xd0] sm:$0xff]  ;;  %v2930_v14 = vld [vmem:[#allocation7 + $0x188] sm:$0xff] }
 0x134   :  { %v901_v16 = vmax.f32 %v897_v26, 0.0  ;;  %v2914_v26 = vld [vmem:[#allocation7 + $0x108] sm:$0xff] }
 0x135   :  { %v750_v38 = vpop.f32.mrf.mxu3  ;;  %1018 = vmatmul.bf16.vlgmr.msra.gmra.mxu2 %v942_v7  ;;  %1485 = vmatpush.bf16.msrb.mxu3 %v2900_v61  ;;  %v1241_v49 = vld [vmem:[#allocation4 + $0x6] sm:$0xff] }
 0x136   :  { %907 = vst [vmem:[#allocation4 + $0x10] sm:$0xff] %v901_v16  ;;  %v3301_v40 = vpack.c.bf16 %v901_v16, %v900_v6  ;;  %v2927_v61 = vld [vmem:[#allocation7 + $0x170] sm:$0xff] }
 0x137   :  { %v852_v50 = vpop.f32.mrf.mxu0  ;;  %1587 = vmatpush.bf16.msrb.mxu0 %v2907_v33 }
 0x138   :  { %v874_v53 = vpop.f32.mrf.mxu1  ;;  %v2905_v50 = vld [vmem:[#allocation7 + $0xc0] sm:$0xff] }
 0x139   :  { %1486 = vmatpush.bf16.msrb.mxu3 %v2899_v9  ;;  %v1408_v9 = vld [vmem:[#allocation4 + $0x7] sm:$0xff] }
 0x13a   :  { %v729_v57 = vpop.f32.mrf.mxu2  ;;  %v914_v37 = vld [vmem:[#allocation3 + $0xf] sm:$0xff] }
 0x13b   :  { %v1104_v63 = vld [vmem:[#allocation3 + $0x9] sm:$0xff]  ;;  %v1105_v47 = vld [vmem:[#allocation3 + $0x11] sm:$0xff]  ;;  %v762_v4 = vadd.f32 %v729_v57, %v644_v55  ;;  %v918_v30 = vpack.c.bf16 %v914_v37, %v913_v56  ;;  %1588 = vmatpush.bf16.msrb.mxu0 %v2906_v46  ;;  %v2935_v55 = vld [vmem:[#allocation7 + $0x1b0] sm:$0xff] }
 0x13c   :  { %v1109_v58 = vpack.c.bf16 %v1105_v47, %v1104_v63  ;;  %v2926_v56 = vld [vmem:[#allocation7 + $0x168] sm:$0xff] }
 0x13d   :  { %v751_v0 = vpop.f32.mrf.mxu3  ;;  %v1242_v31 = vld [vmem:[#allocation4 + $0xe] sm:$0xff]  ;;  %v880_v32 = vadd.f32 %v3281_v59, %v762_v4  ;;  %1089 = vmatmul.bf16.vlgmr.msra.gmra.mxu3 %v918_v30  ;;  %v1243_v44 = vld [vmem:[#allocation4 + $0x16] sm:$0xff] }
 0x13e   :  { %v763_v60 = vadd.f32 %v751_v0, %v645_v3  ;;  %v1246_v2 = vpack.c.bf16 %v1242_v31, %v1241_v49  ;;  %1185 = vmatmul.bf16.vlgmr.msra.gmra.mxu0 %v1109_v58  ;;  %v2915_v59 = vld [vmem:[#allocation7 + $0x110] sm:$0xff]  ;;  %1487 = vmatpush.bf16.msrb.mxu3 %v2898_v12  ;;  %v2934_v3 = vld [vmem:[#allocation7 + $0x1a8] sm:$0xff]  ;;  %v2925_v4 = vld [vmem:[#allocation7 + $0x160] sm:$0xff] }
 0x13f   :  { %v888_v41 = vadd.f32 %v3270_v54, %v880_v32  ;;  %1688 = vmatpush.bf16.msrb.mxu1 %v2915_v59  ;;  %1589 = vmatpush.bf16.msrb.mxu0 %v2905_v50  ;;  %v2933_v0 = vld [vmem:[#allocation7 + $0x1a0] sm:$0xff]  ;;  %v1218_v58 = vld [vmem:[#allocation4 + $0xd] sm:$0xff]  ;;  %v1217_v49 = vld [vmem:[#allocation4 + $0x5] sm:$0xff] }
 0x140   :  { %v881_v6 = vadd.f32 %v3285_v1, %v763_v60  ;;  %1322 = vmatmul.bf16.vlgmr.msra.gmra.mxu1 %v1246_v2  ;;  %v1222_v60 = vpack.c.bf16 %v1218_v58, %v1217_v49  ;;  %v2924_v2 = vld [vmem:[#allocation7 + $0x158] sm:$0xff]  ;;  %v2931_v59 = vld [vmem:[#allocation7 + $0x190] sm:$0xff]  ;;  %v2922_v12 = vld [vmem:[#allocation7 + $0x148] sm:$0xff] }
 0x141   :  { %v892_v13 = vmax.f32 %v888_v41, 0.0  ;;  %v2932_v32 = vld [vmem:[#allocation7 + $0x198] sm:$0xff]  ;;  %v2940_v50 = vld [vmem:[%s3422_s4 + $0x18] sm:$0xff] }
 0x142   :  { %v3311_v11 = vadd.f32 %v3277_v34, %v881_v6  ;;  %v732_v20 = vpop.f32.mrf.mxu2  ;;  %v1409_v5 = vld [vmem:[#allocation4 + $0xf] sm:$0xff]  ;;  %v1410_v25 = vld [vmem:[#allocation4 + $0x17] sm:$0xff] }
 0x143   :  { %908 = vst [vmem:[#allocation3 + $0x20] sm:$0xff] %v892_v13  ;;  %v764_v1 = vadd.f32 %v732_v20, %v3251_v28  ;;  %v943_v18 = vpack.c.bf16 %v892_v13, %v3315_v22  ;;  %v2897_v28 = vld [vmem:[#allocation7 + $0x80] sm:$0xff]  ;;  %1689 = vmatpush.bf16.msrb.mxu1 %v2914_v26  ;;  %v1610_v39 = vld [vmem:[#allocation4 + $0x9] sm:$0xff]  ;;  %v1413_v41 = vpack.c.bf16 %v1409_v5, %v1408_v9 }
 0x144   :  { %v902_v19 = vmax.f32 %v3311_v11, 0.0  ;;  %1488 = vmatpush.bf16.msrb.mxu3 %v2897_v28  ;;  %v1611_v6 = vld [vmem:[#allocation4 + $0x11] sm:$0xff] }
 0x145   :  { %v754_v17 = vpop.f32.mrf.mxu3  ;;  %v882_v24 = vadd.f32 %v3289_v21, %v764_v1  ;;  %1023 = vmatmul.bf16.gmra.mxu2 %v943_v18  ;;  %v915_v21 = vld [vmem:[#allocation3 + $0x17] sm:$0xff]  ;;  %v1615_v10 = vpack.c.bf16 %v1611_v6, %v1610_v39  ;;  %v1219_v20 = vld [vmem:[#allocation4 + $0x15] sm:$0xff]  ;;  %v1711_v11 = vld [vmem:[#allocation4 + $0xa] sm:$0xff] }
 0x146   :  { %910 = vst [vmem:[#allocation4 + $0x20] sm:$0xff] %v902_v19  ;;  %v765_v23 = vadd.f32 %v754_v17, %v3253_v29  ;;  %v2921_v17 = vld [vmem:[#allocation7 + $0x140] sm:$0xff]  ;;  %v1515_v33 = vpack.c.bf16 %v902_v19, %v3315_v22 }
 0x147   :  { %v889_v16 = vadd.f32 %v3270_v54, %v882_v24  ;;  %1690 = vmatpush.bf16.msrb.mxu1 %v2913_v42  ;;  %v2929_v18 = vld [vmem:[#allocation7 + $0x180] sm:$0xff] }
 0x148   :  { %v883_v15 = vadd.f32 %v3297_v27, %v765_v23  ;;  %1885 = vmatpush.bf16.msra.mxu3 %v2936_v48  ;;  %v1712_v19 = vld [vmem:[#allocation4 + $0x12] sm:$0xff] }
 0x149   :  { %v893_v29 = vmax.f32 %v889_v16, 0.0 }
 0x14a   :  { %v899_v35 = vadd.f32 %v3277_v34, %v883_v15  ;;  %v734_v7 = vpop.f32.mrf.mxu2  ;;  %v916_v43 = vld [vmem:[#allocation3 + $0x1f] sm:$0xff]  ;;  %v2928_v34 = vld [vmem:[#allocation7 + $0x178] sm:$0xff] }
 0x14b   :  { %909 = vst [vmem:[#allocation3 + $0x28] sm:$0xff] %v893_v29  ;;  %v919_v8 = vpack.c.bf16 %v916_v43, %v915_v21  ;;  %1784 = vmatpush.bf16.msra.mxu2 %v2928_v34  ;;  %v1106_v51 = vld [vmem:[#allocation3 + $0x19] sm:$0xff]  ;;  %v944_v53 = vpack.c.bf16 %v893_v29, %v893_v29 }
 0x14c   :  { %v3325_v38 = vmax.f32 %v899_v35, 0.0  ;;  %1886 = vmatpush.bf16.msra.mxu3 %v2935_v55  ;;  %v2944_v21 = vld [vmem:[%s3422_s4 + $0x38] sm:$0xff]  ;;  %v2943_v43 = vld [vmem:[%s3422_s4 + $0x30] sm:$0xff]  ;;  %v2938_v55 = vld [vmem:[%s3422_s4 + $0x8] sm:$0xff] }
 0x14d   :  { %v1244_v45 = vld [vmem:[#allocation4 + $0x1e] sm:$0xff]  ;;  %v756_v27 = vpop.f32.mrf.mxu3  ;;  %1094 = vmatmul.bf16.gmra.mxu3 %v919_v8  ;;  %2060 = vmatpush.bf16.msra.mxu0 %v2944_v21  ;;  %v1716_v8 = vpack.c.bf16 %v1712_v19, %v1711_v11  ;;  %v2952_v19 = vld [vmem:[%s3422_s4 + $0x78] sm:$0xff] }
 0x14e   :  { %911 = vst [vmem:[#allocation4 + $0x28] sm:$0xff] %v3325_v38  ;;  %v1247_v54 = vpack.c.bf16 %v1244_v45, %v1243_v44  ;;  %v1220_v13 = vld [vmem:[#allocation4 + $0x1d] sm:$0xff]  ;;  %v1516_v22 = vpack.c.bf16 %v3325_v38, %v3325_v38  ;;  %v1812_v44 = vld [vmem:[#allocation4 + $0xb] sm:$0xff]  ;;  %v1813_v45 = vld [vmem:[#allocation4 + $0x13] sm:$0xff]  ;;  %2082 = vmatpush.bf16.msra.mxu1 %v2952_v19 }
 0x14f   :  { %1785 = vmatpush.bf16.msra.mxu2 %v2927_v61  ;;  %v1223_v1 = vpack.c.bf16 %v1220_v13, %v1219_v20  ;;  %v1411_v23 = vld [vmem:[#allocation4 + $0x1f] sm:$0xff]  ;;  %v1817_v27 = vpack.c.bf16 %v1813_v45, %v1812_v44  ;;  %v2941_v38 = vld [vmem:[%s3422_s4 + $0x20] sm:$0xff] }
 0x150   :  { %1327 = vmatmul.bf16.gmra.mxu1 %v1247_v54  ;;  %1887 = vmatpush.bf16.msra.mxu3 %v2934_v3  ;;  %v1414_v26 = vpack.c.bf16 %v1411_v23, %v1410_v25  ;;  %v1612_v28 = vld [vmem:[#allocation4 + $0x19] sm:$0xff]  ;;  %v2937_v3 = vld [vmem:[%s3422_s4] sm:$0xff] }
 0x151   :  { %2061 = vmatpush.bf16.msra.mxu0 %v2943_v43  ;;  %v2942_v54 = vld [vmem:[%s3422_s4 + $0x28] sm:$0xff] }
 0x152   :  { %v1107_v52 = vld [vmem:[#allocation3 + $0x21] sm:$0xff]  ;;  %v1108_v30 = vld [vmem:[#allocation3 + $0x29] sm:$0xff]  ;;  %v1713_v46 = vld [vmem:[#allocation4 + $0x1a] sm:$0xff] }
 0x153   :  { %v1110_v62 = vpack.c.bf16 %v1107_v52, %v1106_v51  ;;  %v917_v57 = vld [vmem:[#allocation3 + $0x27] sm:$0xff]  ;;  %1786 = vmatpush.bf16.msra.mxu2 %v2926_v56  ;;  %v1111_v31 = vpack.c.bf16 %v1108_v30, %v1108_v30  ;;  %v1814_v51 = vld [vmem:[#allocation4 + $0x1b] sm:$0xff] }
 0x154   :  { %v920_v63 = vpack.c.bf16 %v917_v57, %v917_v57  ;;  %1888 = vmatpush.bf16.msra.mxu3 %v2933_v0 }
 0x155   :  { %1190 = vmatmul.bf16.gmra.mxu0 %v1110_v62  ;;  %1028 = vmatmul.bf16.gmra.mxu2 %v944_v53  ;;  %v1245_v37 = vld [vmem:[#allocation4 + $0x26] sm:$0xff] }
 0x156   :  { %v1248_v47 = vpack.c.bf16 %v1245_v37, %v1245_v37  ;;  %v1613_v24 = vld [vmem:[#allocation4 + $0x21] sm:$0xff]  ;;  %v1614_v42 = vld [vmem:[#allocation4 + $0x29] sm:$0xff]  ;;  %2062 = vmatpush.bf16.msra.mxu0 %v2942_v54 }
 0x157   :  { %1787 = vmatpush.bf16.msra.mxu2 %v2925_v4  ;;  %v1616_v15 = vpack.c.bf16 %v1613_v24, %v1612_v28  ;;  %v1221_v16 = vld [vmem:[#allocation4 + $0x25] sm:$0xff]  ;;  %v1617_v7 = vpack.c.bf16 %v1614_v42, %v1614_v42 }
 0x158   :  { %1889 = vmatpush.bf16.msra.mxu3 %v2932_v32  ;;  %v1224_v35 = vpack.c.bf16 %v1221_v16, %v1221_v16  ;;  %v1714_v34 = vld [vmem:[#allocation4 + $0x22] sm:$0xff]  ;;  %v1715_v53 = vld [vmem:[#allocation4 + $0x2a] sm:$0xff] }
 0x159   :  { %v1717_v48 = vpack.c.bf16 %v1714_v34, %v1713_v46  ;;  %v1815_v61 = vld [vmem:[#allocation4 + $0x23] sm:$0xff]  ;;  %v1718_v56 = vpack.c.bf16 %v1715_v53, %v1715_v53  ;;  %v1816_v57 = vld [vmem:[#allocation4 + $0x2b] sm:$0xff]  ;;  %v2950_v46 = vld [vmem:[%s3422_s4 + $0x68] sm:$0xff] }
 0x15a   :  { %2063 = vmatpush.bf16.msra.mxu0 %v2941_v38  ;;  %v1818_v52 = vpack.c.bf16 %v1815_v61, %v1814_v51  ;;  %v2939_v62 = vld [vmem:[%s3422_s4 + $0x10] sm:$0xff] }
 0x15b   :  { %1788 = vmatpush.bf16.msra.mxu2 %v2924_v2 }
 0x15c   :  { %1890 = vmatpush.bf16.msra.mxu3 %v2931_v59 }
 0x15d   :  { %1099 = vmatmul.bf16.gmra.mxu3 %v920_v63 }
 0x15e   :  { %2064 = vmatpush.bf16.msra.mxu0 %v2940_v50 }
 0x15f   :  { %1789 = vmatpush.bf16.msra.mxu2 %v2923_v36 }
 0x160   :  { %1332 = vmatmul.bf16.gmra.mxu1 %v1248_v47  ;;  %1891 = vmatpush.bf16.msra.mxu3 %v2930_v14  ;;  %v1819_v47 = vpack.c.bf16 %v1816_v57, %v1816_v57 }
 0x162   :  { %2065 = vmatpush.bf16.msra.mxu0 %v2939_v62  ;;  %v2949_v62 = vld [vmem:[%s3422_s4 + $0x60] sm:$0xff] }
 0x163   :  { %1790 = vmatpush.bf16.msra.mxu2 %v2922_v12 }
 0x164   :  { %1892 = vmatpush.bf16.msra.mxu3 %v2929_v18 }
 0x165   :  { %1195 = vmatmul.bf16.gmra.mxu0 %v1111_v31  ;;  %1393 = vmatmul.bf16.vlgmr.msrb.gmra.mxu2 %v1222_v60  ;;  %v2970_v60 = vld [vmem:[%s3423_s5 + $0x1] ss:$0 sm:$0xff] }
 0x166   :  { %2066 = vmatpush.bf16.msra.mxu0 %v2938_v55 }
 0x167   :  { %1791 = vmatpush.bf16.msra.mxu2 %v2921_v17 }
 0x16a   :  { %2067 = vmatpush.bf16.msra.mxu0 %v2937_v3  ;;  %v2948_v3 = vld [vmem:[%s3422_s4 + $0x58] sm:$0xff] }
 0x16d   :  { %1489 = vmatmul.bf16.vlgmr.msrb.gmra.mxu3 %v1413_v41 }
 0x170   :  { %1691 = vmatmul.bf16.vlgmr.msrb.gmra.mxu1 %v1615_v10 }
 0x175   :  { %1590 = vmatmul.bf16.vlgmr.msrb.gmra.mxu0 %v3301_v40  ;;  %1398 = vmatmul.bf16.gmra.mxu2 %v1223_v1  ;;  %v1412_v40 = vld [vmem:[#allocation4 + $0x27] sm:$0xff] }
 0x176   :  { %v1415_v29 = vpack.c.bf16 %v1412_v40, %v1412_v40 }
 0x17d   :  { %1494 = vmatmul.bf16.gmra.mxu3 %v1414_v26 }
 0x180   :  { %1696 = vmatmul.bf16.gmra.mxu1 %v1616_v15 }
 0x185   :  { %1595 = vmatmul.bf16.gmra.mxu0 %v1515_v33  ;;  %1403 = vmatmul.bf16.gmra.mxu2 %v1224_v35 }
 0x18d   :  { %1499 = vmatmul.bf16.gmra.mxu3 %v1415_v29 }
 0x190   :  { %1701 = vmatmul.bf16.gmra.mxu1 %v1617_v7 }
 0x195   :  { %1600 = vmatmul.bf16.gmra.mxu0 %v1516_v22  ;;  %1792 = vmatmul.bf16.vlgmr.msra.gmra.mxu2 %v1716_v8 }
 0x19d   :  { %1893 = vmatmul.bf16.vlgmr.msra.gmra.mxu3 %v1817_v27  ;;  %v2951_v27 = vld [vmem:[%s3422_s4 + $0x70] sm:$0xff] }
 0x19e   :  { %2083 = vmatpush.bf16.msra.mxu1 %v2951_v27 }
 0x1a2   :  { %2084 = vmatpush.bf16.msra.mxu1 %v2950_v46 }
 0x1a5   :  { %1797 = vmatmul.bf16.gmra.mxu2 %v1717_v48 }
 0x1a6   :  { %2085 = vmatpush.bf16.msra.mxu1 %v2949_v62 }
 0x1aa   :  { %2086 = vmatpush.bf16.msra.mxu1 %v2948_v3 }
 0x1ad   :  { %1898 = vmatmul.bf16.gmra.mxu3 %v1818_v52 }
 0x1b5   :  { %1802 = vmatmul.bf16.gmra.mxu2 %v1718_v56 }
 0x1b8   :  { %v1019_v37 = vpop.f32.mrf.mxu2 }
 0x1bb   :  { %v1186_v4 = vpop.f32.mrf.mxu0 }
 0x1bd   :  { %v3358_v63 = vpop.f32.mrf.mxu1  ;;  %1903 = vmatmul.bf16.gmra.mxu3 %v1819_v47 }
 0x1c0   :  { %v1090_v0 = vpop.f32.mrf.mxu3  ;;  %v1021_v30 = vpop.f32.mrf.mxu2 }
 0x1c1   :  { %v1091_v58 = vadd.f32 %v1090_v0, %v1019_v37 }
 0x1c3   :  { %v1200_v31 = vadd.f32 %v1186_v4, %v1091_v58  ;;  %v1188_v5 = vpop.f32.mrf.mxu0  ;;  %v2946_v58 = vld [vmem:[%s3422_s4 + $0x48] sm:$0xff] }
 0x1c5   :  { %v3360_v49 = vpop.f32.mrf.mxu1  ;;  %v1206_v39 = vadd.f32 %v2970_v60, %v1200_v31 }
 0x1c7   :  { %v1211_v10 = vmax.f32 %v1206_v39, 0.0 }
 0x1c8   :  { %v1092_v2 = vpop.f32.mrf.mxu3  ;;  %v1024_v32 = vpop.f32.mrf.mxu2 }
 0x1c9   :  { %v1093_v36 = vadd.f32 %v1092_v2, %v1021_v30  ;;  %v2947_v30 = vld [vmem:[%s3422_s4 + $0x50] sm:$0xff] }
 0x1ca   :  { %2087 = vmatpush.bf16.msra.mxu1 %v2947_v30 }
 0x1cb   :  { %v1201_v6 = vadd.f32 %v1188_v5, %v1093_v36  ;;  %v2945_v36 = vld [vmem:[%s3422_s4 + $0x40] sm:$0xff] }
 0x1cd   :  { %v3365_v9 = vpop.f32.mrf.mxu1  ;;  %v1207_v41 = vadd.f32 %v2970_v60, %v1201_v6 }
 0x1ce   :  { %2088 = vmatpush.bf16.msra.mxu1 %v2946_v58 }
 0x1cf   :  { %v1212_v59 = vmax.f32 %v1207_v41, 0.0 }
 0x1d0   :  { %v1095_v12 = vpop.f32.mrf.mxu3  ;;  %v1026_v13 = vpop.f32.mrf.mxu2 }
 0x1d1   :  { %v1924_v14 = vpack.c.bf16 %v1212_v59, %v1211_v10  ;;  %v1096_v1 = vadd.f32 %v1095_v12, %v1024_v32 }
 0x1d2   :  { %v1191_v20 = vpop.f32.mrf.mxu0  ;;  %2089 = vmatpush.bf16.msra.mxu1 %v2945_v36 }
 0x1d3   :  { %2068 = vmatmul.bf16.vlgmr.msra.gmra.mxu0 %v1924_v14  ;;  %v1202_v18 = vadd.f32 %v1191_v20, %v1096_v1 }
 0x1d5   :  { %v3367_v17 = vpop.f32.mrf.mxu1  ;;  %v1208_v28 = vadd.f32 %v2970_v60, %v1202_v18 }
 0x1d7   :  { %v1213_v35 = vmax.f32 %v1208_v28, 0.0 }
 0x1d8   :  { %v1097_v23 = vpop.f32.mrf.mxu3  ;;  %v1029_v24 = vpop.f32.mrf.mxu2 }
 0x1d9   :  { %v1098_v25 = vadd.f32 %v1097_v23, %v1026_v13 }
 0x1da   :  { %v1193_v26 = vpop.f32.mrf.mxu0 }
 0x1db   :  { %v1203_v15 = vadd.f32 %v1193_v26, %v1098_v25 }
 0x1dd   :  { %v3369_v16 = vpop.f32.mrf.mxu1  ;;  %v1209_v33 = vadd.f32 %v2970_v60, %v1203_v15 }
 0x1df   :  { %v1214_v40 = vmax.f32 %v1209_v33, 0.0  ;;  %v2971_v33 = vld [vmem:[%s3423_s5 + $0x3] ss:$0 sm:$0xff] }
 0x1e0   :  { %v1100_v42 = vpop.f32.mrf.mxu3  ;;  %v1031_v29 = vpop.f32.mrf.mxu2 }
 0x1e1   :  { %v1101_v7 = vadd.f32 %v1100_v42, %v1029_v24  ;;  %v1926_v21 = vpack.c.bf16 %v1214_v40, %v1213_v35 }
 0x1e2   :  { %v1196_v43 = vpop.f32.mrf.mxu0 }
 0x1e3   :  { %2073 = vmatmul.bf16.gmra.mxu0 %v1926_v21  ;;  %v1204_v22 = vadd.f32 %v1196_v43, %v1101_v7 }
 0x1e5   :  { %v1335_v11 = vpop.f32.mrf.mxu1  ;;  %v1210_v45 = vadd.f32 %v2970_v60, %v1204_v22 }
 0x1e7   :  { %v1215_v48 = vmax.f32 %v1210_v45, 0.0 }
 0x1e8   :  { %v1102_v8 = vpop.f32.mrf.mxu3  ;;  %v1394_v44 = vpop.f32.mrf.mxu2 }
 0x1e9   :  { %v1928_v61 = vpack.c.bf16 %v1215_v48, %v1215_v48  ;;  %v1395_v10 = vadd.f32 %v1394_v44, %v3358_v63 }
 0x1ea   :  { %v1198_v54 = vpop.f32.mrf.mxu0 }
 0x1ed   :  { %v1692_v34 = vpop.f32.mrf.mxu1 }
 0x1f0   :  { %v1490_v38 = vpop.f32.mrf.mxu3  ;;  %v1396_v50 = vpop.f32.mrf.mxu2 }
 0x1f1   :  { %v1504_v13 = vadd.f32 %v1490_v38, %v1395_v10  ;;  %v1397_v20 = vadd.f32 %v1396_v50, %v3360_v49 }
 0x1f2   :  { %v1591_v51 = vpop.f32.mrf.mxu0 }
 0x1f3   :  { %2077 = vmatmul.bf16.gmra.mxu0 %v1928_v61  ;;  %v1605_v1 = vadd.f32 %v1591_v51, %v1504_v13 }
 0x1f5   :  { %v1694_v52 = vpop.f32.mrf.mxu1  ;;  %v1706_v26 = vadd.f32 %v1692_v34, %v1605_v1 }
 0x1f8   :  { %v1492_v53 = vpop.f32.mrf.mxu3  ;;  %v1399_v55 = vpop.f32.mrf.mxu2 }
 0x1f9   :  { %v1505_v18 = vadd.f32 %v1492_v53, %v1397_v20  ;;  %v1400_v63 = vadd.f32 %v1399_v55, %v3365_v9 }
 0x1fa   :  { %v1593_v56 = vpop.f32.mrf.mxu0 }
 0x1fb   :  { %v1606_v25 = vadd.f32 %v1593_v56, %v1505_v18 }
 0x1fd   :  { %v1697_v57 = vpop.f32.mrf.mxu1  ;;  %v1707_v35 = vadd.f32 %v1694_v52, %v1606_v25 }
 0x200   :  { %v1495_v37 = vpop.f32.mrf.mxu3  ;;  %v1401_v47 = vpop.f32.mrf.mxu2 }
 0x201   :  { %v1506_v7 = vadd.f32 %v1495_v37, %v1400_v63  ;;  %v1402_v43 = vadd.f32 %v1401_v47, %v3367_v17 }
 0x202   :  { %v1596_v4 = vpop.f32.mrf.mxu0 }
 0x203   :  { %v1607_v19 = vadd.f32 %v1596_v4, %v1506_v7 }
 0x205   :  { %v1699_v0 = vpop.f32.mrf.mxu1  ;;  %v1708_v46 = vadd.f32 %v1697_v57, %v1607_v19 }
 0x208   :  { %v1497_v31 = vpop.f32.mrf.mxu3  ;;  %v1404_v60 = vpop.f32.mrf.mxu2 }
 0x209   :  { %v1507_v22 = vadd.f32 %v1497_v31, %v1402_v43  ;;  %v1405_v48 = vadd.f32 %v1404_v60, %v3369_v16 }
 0x20a   :  { %v1598_v2 = vpop.f32.mrf.mxu0 }
 0x20b   :  { %v1608_v34 = vadd.f32 %v1598_v2, %v1507_v22 }
 0x20d   :  { %v1702_v32 = vpop.f32.mrf.mxu1  ;;  %v1709_v50 = vadd.f32 %v1699_v0, %v1608_v34 }
 0x210   :  { %v1500_v5 = vpop.f32.mrf.mxu3  ;;  %v1406_v39 = vpop.f32.mrf.mxu2 }
 0x211   :  { %v1508_v61 = vadd.f32 %v1500_v5, %v1405_v48 }
 0x212   :  { %v1601_v6 = vpop.f32.mrf.mxu0 }
 0x213   :  { %v1609_v55 = vadd.f32 %v1601_v6, %v1508_v61 }
 0x215   :  { %v1704_v41 = vpop.f32.mrf.mxu1  ;;  %v1710_v47 = vadd.f32 %v1702_v32, %v1609_v55  ;;  %v2972_v32 = vld [vmem:[%s3423_s5 + $0x4] ss:$0 sm:$0xff] }
 0x218   :  { %v1502_v59 = vpop.f32.mrf.mxu3  ;;  %v1793_v12 = vpop.f32.mrf.mxu2 }
 0x219   :  { %v1807_v28 = vadd.f32 %v1793_v12, %v1706_v26 }
 0x21a   :  { %v1603_v14 = vpop.f32.mrf.mxu0 }
 0x220   :  { %v1894_v23 = vpop.f32.mrf.mxu3  ;;  %v1795_v24 = vpop.f32.mrf.mxu2 }
 0x221   :  { %v1908_v15 = vadd.f32 %v1894_v23, %v1807_v28  ;;  %v1808_v40 = vadd.f32 %v1795_v24, %v1707_v35 }
 0x223   :  { %v1914_v49 = vadd.f32 %v2971_v33, %v1908_v15 }
 0x225   :  { %v1919_v8 = vmax.f32 %v1914_v49, 0.0 }
 0x228   :  { %v1896_v42 = vpop.f32.mrf.mxu3  ;;  %v1798_v29 = vpop.f32.mrf.mxu2 }
 0x229   :  { %v1909_v21 = vadd.f32 %v1896_v42, %v1808_v40  ;;  %v1809_v9 = vadd.f32 %v1798_v29, %v1708_v46 }
 0x22b   :  { %v1915_v11 = vadd.f32 %v2971_v33, %v1909_v21 }
 0x22d   :  { %v1920_v44 = vmax.f32 %v1915_v11, 0.0 }
 0x22f   :  { %v1925_v45 = vpack.c.bf16 %v1920_v44, %v1919_v8 }
 0x230   :  { %v1899_v27 = vpop.f32.mrf.mxu3  ;;  %v1800_v54 = vpop.f32.mrf.mxu2 }
 0x231   :  { %2090 = vmatmul.bf16.vlgmr.msra.gmra.mxu1 %v1925_v45  ;;  %v1910_v38 = vadd.f32 %v1899_v27, %v1809_v9  ;;  %v1810_v51 = vadd.f32 %v1800_v54, %v1709_v50 }
 0x233   :  { %v1916_v62 = vadd.f32 %v2971_v33, %v1910_v38 }
 0x235   :  { %v1921_v3 = vmax.f32 %v1916_v62, 0.0 }
 0x238   :  { %v1901_v52 = vpop.f32.mrf.mxu3  ;;  %v1803_v17 = vpop.f32.mrf.mxu2 }
 0x239   :  { %v1911_v53 = vadd.f32 %v1901_v52, %v1810_v51  ;;  %v1811_v58 = vadd.f32 %v1803_v17, %v1710_v47 }
 0x23b   :  { %v1917_v56 = vadd.f32 %v2971_v33, %v1911_v53 }
 0x23d   :  { %v1922_v37 = vmax.f32 %v1917_v56, 0.0 }
 0x23f   :  { %v1927_v4 = vpack.c.bf16 %v1922_v37, %v1921_v3 }
 0x240   :  { %v1904_v30 = vpop.f32.mrf.mxu3  ;;  %v1805_v57 = vpop.f32.mrf.mxu2 }
 0x241   :  { %2095 = vmatmul.bf16.gmra.mxu1 %v1927_v4  ;;  %v1912_v31 = vadd.f32 %v1904_v30, %v1811_v58 }
 0x243   :  { %v1918_v16 = vadd.f32 %v2971_v33, %v1912_v31 }
 0x245   :  { %v1923_v0 = vmax.f32 %v1918_v16, 0.0 }
 0x247   :  { %v1929_v2 = vpack.c.bf16 %v1923_v0, %v1923_v0 }
 0x248   :  { %v1906_v60 = vpop.f32.mrf.mxu3 }
 0x250   :  { %v2069_v36 = vpop.f32.mrf.mxu0 }
 0x251   :  { %2099 = vmatmul.bf16.gmra.mxu1 %v1929_v2  ;;  %v2070_v59 = vadd.f32 %v2972_v32, %v2069_v36 }
 0x258   :  { %v2071_v5 = vpop.f32.mrf.mxu0 }
 0x259   :  { %v2072_v14 = vadd.f32 %v2972_v32, %v2071_v5 }
 0x260   :  { %v2074_v39 = vpop.f32.mrf.mxu0 }
 0x268   :  { %v2075_v41 = vpop.f32.mrf.mxu0 }
 0x269   :  { %v2076_v23 = vadd.f32 %v2972_v32, %v2075_v41 }
 0x270   :  { %v2078_v6 = vpop.f32.mrf.mxu0 }
 0x271   :  { %v2079_v26 = vadd.f32 %v2972_v32, %v2078_v6 }
 0x278   :  { %v2080_v10 = vpop.f32.mrf.mxu0 }
 0x2ae   :  { %v2091_v12 = vpop.f32.mrf.mxu1 }
 0x2af   :  { %v2092_v13 = vadd.f32 %v2091_v12, %v2070_v59 }
 0x2b1   :  { %2104 = vst [vmem:[%s3424_s6] sm:$0xff] %v2092_v13 }
 0x2b6   :  { %v2093_v20 = vpop.f32.mrf.mxu1 }
 0x2b7   :  { %v2094_v1 = vadd.f32 %v2093_v20, %v2072_v14 }
 0x2b9   :  { %2105 = vst [vmem:[%s3424_s6 + $0x8] sm:$0xff] %v2094_v1 }
 0x2be   :  { %v2096_v18 = vpop.f32.mrf.mxu1 }
 0x2c6   :  { %v2097_v24 = vpop.f32.mrf.mxu1 }
 0x2c7   :  { %v2098_v25 = vadd.f32 %v2097_v24, %v2076_v23 }
 0x2c9   :  { %2799 = vst [vmem:[%s3424_s6 + $0x10] sm:$0xff] %v2098_v25 }
 0x2ce   :  { %v2100_v28 = vpop.f32.mrf.mxu1 }
 0x2cf   :  { %v2101_v15 = vadd.f32 %v2100_v28, %v2079_v26 }
 0x2d1   :  { %2800 = vst [vmem:[%s3424_s6 + $0x18] sm:$0xff] %v2101_v15 }
 0x2d6   :  { %v2102_v33 = vpop.f32.mrf.mxu1 }
 0x2d7   :  { %2113 = vsyncpa [#allocation6], 1 }
 0x2d8   :  { %2114 = vsyncpa [#allocation8], 1 }

</bundles_post_ra>
